<compile_context>
chip_gen: v5e
topology: v5e:2x2
jax: 0.10.0
libtpu: 0.0.40
codegen_flags: <defaults>
</compile_context>

<pallas_src>
import numpy as np
import jax
import jax.numpy as jnp
from jax.experimental import pallas as pl
from jax.experimental.pallas import tpu as pltpu

LANE = 128
VMEM_LIMIT = 32 * 1024 * 1024  # conservative scoped-VMEM budget, fits v5e/v6e/v7x


# ------------------------------- tiling helpers ------------------------------ #

def _rup(n, m=LANE):
    return ((n + m - 1) // m) * m


def _pick_rows(m, target=512):
    """Largest row-tile <= target that divides m (keeps blocks even, no OOB tiles)."""
    for cand in (target, target // 2, 128, 64, 32, 16, 8):
        if cand <= m and m % cand == 0:
            return cand
    return m


def _pick_k(k, target=512):
    """K-tile: multiple of 128 dividing k (<= target); falls back to full K."""
    for cand in (512, 384, 256, 128):
        if cand <= k and k % cand == 0:
            return cand
    return k


def _pad_last(a, target):
    pad = target - a.shape[-1]
    if pad == 0:
        return a
    return jnp.pad(a, [(0, 0)] * (a.ndim - 1) + [(0, pad)])


def _pad_last2(a, t0, t1):
    p0, p1 = t0 - a.shape[-2], t1 - a.shape[-1]
    if p0 == 0 and p1 == 0:
        return a
    return jnp.pad(a, [(0, 0)] * (a.ndim - 2) + [(0, p0), (0, p1)])


# ----------------------------- Pallas kernels ------------------------------ #

def _matmul_bn_relu_kernel(x_ref, w_ref, s_ref, b_ref, o_ref, acc_ref):
    # x:(tm,tk) bf16, w:(tk,N) bf16, s/b:(1,N) f32 folded BN, acc:(tm,N) f32 VMEM.
    @pl.when(pl.program_id(1) == 0)
    def _init():
        acc_ref[...] = jnp.zeros_like(acc_ref)

    acc_ref[...] += jnp.dot(x_ref[...], w_ref[...],
                            preferred_element_type=jnp.float32)

    @pl.when(pl.program_id(1) == pl.num_programs(1) - 1)
    def _finalize():
        y = acc_ref[...] * s_ref[...] + b_ref[...]
        o_ref[...] = jnp.maximum(y, 0.0).astype(o_ref.dtype)


def matmul_bn_relu(x2d, w, scale, bias, out_dtype=jnp.bfloat16):
    """(M,K)@(K,N) + folded BN + ReLU, tiled over M (parallel) and K (reduction)."""
    M, K = x2d.shape
    Kw, Nc = w.shape
    assert K == Kw and K % LANE == 0 and Nc % LANE == 0
    tm, tk = _pick_rows(M), _pick_k(K)
    grid = (M // tm, K // tk)
    scale = scale.reshape(1, Nc).astype(jnp.float32)
    bias = bias.reshape(1, Nc).astype(jnp.float32)
    cost = pl.CostEstimate(
        flops=2 * M * Nc * K,
        transcendentals=0,
        bytes_accessed=M * K * x2d.dtype.itemsize + K * Nc * w.dtype.itemsize
        + M * Nc * jnp.dtype(out_dtype).itemsize + 2 * Nc * 4,
    )
    return pl.pallas_call(
        _matmul_bn_relu_kernel,
        out_shape=jax.ShapeDtypeStruct((M, Nc), out_dtype),
        grid=grid,
        in_specs=[
            pl.BlockSpec((tm, tk), lambda i, k: (i, k)),
            pl.BlockSpec((tk, Nc), lambda i, k: (k, 0)),
            pl.BlockSpec((1, Nc), lambda i, k: (0, 0)),
            pl.BlockSpec((1, Nc), lambda i, k: (0, 0)),
        ],
        out_specs=pl.BlockSpec((tm, Nc), lambda i, k: (i, 0)),
        scratch_shapes=[pltpu.VMEM((tm, Nc), jnp.float32)],
        compiler_params=pltpu.CompilerParams(
            dimension_semantics=("parallel", "arbitrary"),
            vmem_limit_bytes=VMEM_LIMIT),
        cost_estimate=cost,
    )(x2d, w, scale, bias)


def _conv3_proj_add_relu_kernel(y2_ref, w3_ref, s3_ref, b3_ref,
                                xs_ref, ws_ref, ss_ref, bs_ref, o_ref):
    # conv3 (1x1)+BN+ReLU, projection shortcut (1x1)+BN+ReLU, residual add, ReLU.
    a = jnp.dot(y2_ref[...], w3_ref[...], preferred_element_type=jnp.float32)
    a = jnp.maximum(a * s3_ref[...] + b3_ref[...], 0.0)
    c = jnp.dot(xs_ref[...], ws_ref[...], preferred_element_type=jnp.float32)
    c = jnp.maximum(c * ss_ref[...] + bs_ref[...], 0.0)
    o_ref[...] = jnp.maximum(a + c, 0.0).astype(o_ref.dtype)


def conv3_proj_add_relu(y2, w3, s3, b3, xs, ws, ss, bs):
    M, Kc = y2.shape
    _, C4p = w3.shape
    Ki = xs.shape[1]
    tm = _pick_rows(M)
    s3 = s3.reshape(1, C4p).astype(jnp.float32)
    b3 = b3.reshape(1, C4p).astype(jnp.float32)
    ss = ss.reshape(1, C4p).astype(jnp.float32)
    bs = bs.reshape(1, C4p).astype(jnp.float32)
    cost = pl.CostEstimate(
        flops=2 * M * C4p * (Kc + Ki),
        transcendentals=0,
        bytes_accessed=(M * (Kc + Ki) + (Kc + Ki) * C4p) * 2 + M * C4p * 4,
    )
    return pl.pallas_call(
        _conv3_proj_add_relu_kernel,
        out_shape=jax.ShapeDtypeStruct((M, C4p), jnp.float32),
        grid=(M // tm,),
        in_specs=[
            pl.BlockSpec((tm, Kc), lambda i: (i, 0)),
            pl.BlockSpec((Kc, C4p), lambda i: (0, 0)),
            pl.BlockSpec((1, C4p), lambda i: (0, 0)),
            pl.BlockSpec((1, C4p), lambda i: (0, 0)),
            pl.BlockSpec((tm, Ki), lambda i: (i, 0)),
            pl.BlockSpec((Ki, C4p), lambda i: (0, 0)),
            pl.BlockSpec((1, C4p), lambda i: (0, 0)),
            pl.BlockSpec((1, C4p), lambda i: (0, 0)),
        ],
        out_specs=pl.BlockSpec((tm, C4p), lambda i: (i, 0)),
        compiler_params=pltpu.CompilerParams(
            dimension_semantics=("parallel",),
            vmem_limit_bytes=VMEM_LIMIT),
        cost_estimate=cost,
    )(y2, w3, s3, b3, xs, ws, ss, bs)


def _conv3_identity_add_relu_kernel(y2_ref, w3_ref, s3_ref, b3_ref, res_ref, o_ref):
    a = jnp.dot(y2_ref[...], w3_ref[...], preferred_element_type=jnp.float32)
    a = jnp.maximum(a * s3_ref[...] + b3_ref[...], 0.0)
    o_ref[...] = jnp.maximum(a + res_ref[...], 0.0).astype(o_ref.dtype)


def conv3_identity_add_relu(y2, w3, s3, b3, res):
    M, Kc = y2.shape
    _, C4p = w3.shape
    tm = _pick_rows(M)
    s3 = s3.reshape(1, C4p).astype(jnp.float32)
    b3 = b3.reshape(1, C4p).astype(jnp.float32)
    cost = pl.CostEstimate(
        flops=2 * M * C4p * Kc, transcendentals=0,
        bytes_accessed=M * Kc * 2 + Kc * C4p * 2 + 2 * M * C4p * 4)
    return pl.pallas_call(
        _conv3_identity_add_relu_kernel,
        out_shape=jax.ShapeDtypeStruct((M, C4p), jnp.float32),
        grid=(M // tm,),
        in_specs=[
            pl.BlockSpec((tm, Kc), lambda i: (i, 0)),
            pl.BlockSpec((Kc, C4p), lambda i: (0, 0)),
            pl.BlockSpec((1, C4p), lambda i: (0, 0)),
            pl.BlockSpec((1, C4p), lambda i: (0, 0)),
            pl.BlockSpec((tm, C4p), lambda i: (i, 0)),
        ],
        out_specs=pl.BlockSpec((tm, C4p), lambda i: (i, 0)),
        compiler_params=pltpu.CompilerParams(
            dimension_semantics=("parallel",),
            vmem_limit_bytes=VMEM_LIMIT),
        cost_estimate=cost,
    )(y2, w3, s3, b3, res)


# ------------------------------ Forward pass ------------------------------- #

def bottleneck_forward(x_nchw, params, stride):
    """Pallas implementation of BottleNeck.forward. x_nchw: (N, Cin, H, W) f32."""
    N, Cin, H, W = x_nchw.shape
    Cout = params["w1"].shape[-1]
    C4 = 4 * Cout
    Cin_p, Cout_p, C4_p = _rup(Cin), _rup(Cout), _rup(C4)

    # Fold/pad params to lane-dense (128-multiple) channels, weights in bf16 (MXU).
    w1 = _pad_last2(params["w1"].reshape(Cin, Cout), Cin_p, Cout_p).astype(jnp.bfloat16)
    s1, b1 = _pad_last(params["s1"], Cout_p), _pad_last(params["b1"], Cout_p)
    w2 = _pad_last2(params["w2"], Cout_p, Cout_p).reshape(9 * Cout_p, Cout_p).astype(jnp.bfloat16)
    s2, b2 = _pad_last(params["s2"], Cout_p), _pad_last(params["b2"], Cout_p)
    w3 = _pad_last2(params["w3"].reshape(Cout, C4), Cout_p, C4_p).astype(jnp.bfloat16)
    s3, b3 = _pad_last(params["s3"], C4_p), _pad_last(params["b3"], C4_p)

    # NCHW -> NHWC, pad channels (padded channels stay exactly 0 through all layers).
    x = jnp.transpose(x_nchw, (0, 2, 3, 1))
    x_p = _pad_last(x, Cin_p)

    # conv1: 1x1 + BN + ReLU  ->  channel matmul over M = N*H*W rows.
    y1 = matmul_bn_relu(
        x_p.astype(jnp.bfloat16).reshape(N * H * W, Cin_p), w1, s1, b1,
        out_dtype=jnp.bfloat16,
    ).reshape(N, H, W, Cout_p)

    # conv2: 3x3 / stride / pad=1 + BN + ReLU.  Stride is applied while extracting
    # the 9 taps (only Ho*Wo rows computed); the taps form the K-reduction grid axis
    # of the tiled matmul, so each tap slab streams through VMEM once.
    Ho = (H - 1) // stride + 1
    Wo = (W - 1) // stride + 1
    xp = jnp.pad(y1, ((0, 0), (1, 1), (1, 1), (0, 0)))
    cols = jnp.concatenate(
        [xp[:, kh:kh + (Ho - 1) * stride + 1:stride,
            kw:kw + (Wo - 1) * stride + 1:stride, :]
         for kh in range(3) for kw in range(3)],
        axis=-1,
    )  # (N, Ho, Wo, 9*Cout_p); (kh, kw, cin) ordering matches the HWIO reshape of w2
    M2 = N * Ho * Wo
    y2 = matmul_bn_relu(cols.reshape(M2, 9 * Cout_p), w2, s2, b2,
                        out_dtype=jnp.bfloat16)

    if stride != 1 or Cin != C4:
        # Projection shortcut: conv3 + shortcut matmul + residual add + final ReLU
        # fused into one kernel (single HBM pass over the M2 x C4 output).
        ws = _pad_last2(params["ws"].reshape(Cin, C4), Cin_p, C4_p).astype(jnp.bfloat16)
        ss, bs = _pad_last(params["ss"], C4_p), _pad_last(params["bs"], C4_p)
        xs = x_p[:, ::stride, ::stride, :].astype(jnp.bfloat16).reshape(M2, Cin_p)
        out = conv3_proj_add_relu(y2, w3, s3, b3, xs, ws, ss, bs)
    else:
        # Identity shortcut: only valid when shapes already match.
        assert Cin == C4 and stride == 1, "identity shortcut requires Cin == 4*Cout, stride == 1"
        res = x_p.astype(jnp.float32).reshape(M2, C4_p)
        out = conv3_identity_add_relu(y2, w3, s3, b3, res)

    out = out.reshape(N, Ho, Wo, C4_p)[..., :C4]
    return jnp.transpose(out, (0, 3, 1, 2))  # back to NCHW


# --------------------------- Deterministic params --------------------------- #

def init_params(key, cin, cout):
    eps = 1e-5
    ks = jax.random.split(key, 4)

    def conv_w(k, ksz, kin, kout):
        fan = ksz * ksz * kin
        return jax.random.normal(k, (ksz, ksz, kin, kout), jnp.float32) / np.sqrt(fan)

    def bn_fold(c, off):
        i = jnp.arange(c, dtype=jnp.float32)
        gamma = 1.0 + 0.05 * i + 0.01 * off
        beta = 0.02 * i - 0.03 * off
        mean = 0.01 * i + 0.02 * off
        var = 1.0 + 0.04 * i
        scale = gamma / jnp.sqrt(var + eps)
        bias = beta - mean * scale
        return scale, bias

    p = {}
    p["w1"] = conv_w(ks[0], 1, cin, cout)
    p["s1"], p["b1"] = bn_fold(cout, 0)
    p["w2"] = conv_w(ks[1], 3, cout, cout)
    p["s2"], p["b2"] = bn_fold(cout, 1)
    p["w3"] = conv_w(ks[2], 1, cout, 4 * cout)
    p["s3"], p["b3"] = bn_fold(4 * cout, 2)
    p["ws"] = conv_w(ks[3], 1, cin, 4 * cout)
    p["ss"], p["bs"] = bn_fold(4 * cout, 3)
    return p


# ------------------------------ Pure-JAX reference -------------------------- #

def ref_forward(x_nchw, params, stride):
    dn = ("NCHW", "HWIO", "NCHW")

    def cbr(x, w, s, b, st, pad):
        y = jax.lax.conv_general_dilated(x, w, (st, st), pad, dimension_numbers=dn)
        y = y * s[None, :, None, None] + b[None, :, None, None]
        return jnp.maximum(y, 0.0)

    Cin = x_nchw.shape[1]
    C4 = params["w3"].shape[-1]
    y = cbr(x_nchw, params["w1"], params["s1"], params["b1"], 1, "VALID")
    y = cbr(y, params["w2"], params["s2"], params["b2"], stride, ((1, 1), (1, 1)))
    y = cbr(y, params["w3"], params["s3"], params["b3"], 1, "VALID")
    if stride != 1 or Cin != C4:
        sc = cbr(x_nchw, params["ws"], params["ss"], params["bs"], stride, "VALID")
    else:
        sc = x_nchw
    return jnp.maximum(y + sc, 0.0)


# ----------------------------------- Main ----------------------------------- #

if __name__ == "__main__":
    key = jax.random.PRNGKey(0)
    k_x, k_p = jax.random.split(key)

    N, Cin, H, W = 2, 4, 16, 16
    Cout, stride = 4, 2  # exercises the projection shortcut path

    x = jax.random.normal(k_x, (N, Cin, H, W), jnp.float32)
    params = init_params(k_p, Cin, Cout)

    fwd = jax.jit(bottleneck_forward, static_argnames=("stride",))
    out = fwd(x, params, stride=stride)
    out = jax.block_until_ready(out)

    ref = ref_forward(x, params, stride)
    np.testing.assert_allclose(np.asarray(out), np.asarray(ref), rtol=5e-2, atol=5e-2)

    print("KERNEL_OK")
</pallas_src>

<mosaic_0001>
module attributes {stable_mosaic.version = 11 : i64} {
  func.func @_matmul_bn_relu_kernel(%arg0: i32, %arg1: i32, %arg2: memref<512x128xbf16, #tpu.memory_space<vmem>>, %arg3: memref<128x128xbf16, #tpu.memory_space<vmem>>, %arg4: memref<1x128xf32, #tpu.memory_space<vmem>>, %arg5: memref<1x128xf32, #tpu.memory_space<vmem>>, %arg6: memref<512x128xbf16, #tpu.memory_space<vmem>>, %arg7: memref<512x128xf32, #tpu.memory_space<vmem>>) attributes {dimension_semantics = [#tpu.dimension_semantics<parallel>, #tpu.dimension_semantics<arbitrary>], iteration_bounds = array<i64: 1, 1>, scalar_prefetch = 0 : i64, scratch_operands = 1 : i64, tpu.core_type = #tpu.core_type<tc>, window_params = [{transform_indices = @transform_0, window_bounds = array<i64: 512, 128>}, {transform_indices = @transform_1, window_bounds = array<i64: 128, 128>}, {pipeline_mode = #tpu.pipeline_mode<synchronous>, transform_indices = @transform_2, window_bounds = array<i64: 1, 128>}, {pipeline_mode = #tpu.pipeline_mode<synchronous>, transform_indices = @transform_3, window_bounds = array<i64: 1, 128>}, {transform_indices = @transform_4, window_bounds = array<i64: 512, 128>}]} {
    %c0_i32 = arith.constant 0 : i32
    %0 = arith.cmpi eq, %arg1, %c0_i32 : i32
    %1 = arith.extui %0 : i1 to i32
    %c0_i32_0 = arith.constant 0 : i32
    %2 = arith.cmpi ne, %1, %c0_i32_0 : i32
    scf.if %2 {
      %cst_10 = arith.constant 0.000000e+00 : f32
      %12 = vector.broadcast %cst_10 : f32 to vector<512x128xf32>
      %c0_11 = arith.constant 0 : index
      %c0_12 = arith.constant 0 : index
      %13 = vector.load %arg7[%c0_11, %c0_12] : memref<512x128xf32, #tpu.memory_space<vmem>>, vector<512x128xf32>
      tpu.vector_store %arg7[%c0_11, %c0_12], %12 {strides = array<i32>} : memref<512x128xf32, #tpu.memory_space<vmem>>, vector<512x128xf32>,
    } else {
    }
    %c0 = arith.constant 0 : index
    %c0_1 = arith.constant 0 : index
    %3 = vector.load %arg7[%c0, %c0_1] : memref<512x128xf32, #tpu.memory_space<vmem>>, vector<512x128xf32>
    %c0_2 = arith.constant 0 : index
    %c0_3 = arith.constant 0 : index
    %4 = vector.load %arg2[%c0_2, %c0_3] : memref<512x128xbf16, #tpu.memory_space<vmem>>, vector<512x128xbf16>
    %c0_4 = arith.constant 0 : index
    %c0_5 = arith.constant 0 : index
    %5 = vector.load %arg3[%c0_4, %c0_5] : memref<128x128xbf16, #tpu.memory_space<vmem>>, vector<128x128xbf16>
    %cst = arith.constant dense<0.000000e+00> : vector<512x128xf32>
    %6 = tpu.matmul %4, %5, %cst {dimension_numbers = #tpu.dot_dimension_numbers<[1], [0], [0], [1], [0, 0, 1, 1], [], []>} : vector<512x128xbf16>, vector<128x128xbf16>, vector<512x128xf32> -> vector<512x128xf32>
    %7 = arith.addf %3, %6 : vector<512x128xf32>
    %c0_6 = arith.constant 0 : index
    %c0_7 = arith.constant 0 : index
    %8 = vector.load %arg7[%c0_6, %c0_7] : memref<512x128xf32, #tpu.memory_space<vmem>>, vector<512x128xf32>
    tpu.vector_store %arg7[%c0_6, %c0_7], %7 {strides = array<i32>} : memref<512x128xf32, #tpu.memory_space<vmem>>, vector<512x128xf32>,
    %c0_i32_8 = arith.constant 0 : i32
    %9 = arith.cmpi eq, %arg1, %c0_i32_8 : i32
    %10 = arith.extui %9 : i1 to i32
    %c0_i32_9 = arith.constant 0 : i32
    %11 = arith.cmpi ne, %10, %c0_i32_9 : i32
    scf.if %11 {
      %c0_10 = arith.constant 0 : index
      %c0_11 = arith.constant 0 : index
      %12 = vector.load %arg7[%c0_10, %c0_11] : memref<512x128xf32, #tpu.memory_space<vmem>>, vector<512x128xf32>
      %c0_12 = arith.constant 0 : index
      %c0_13 = arith.constant 0 : index
      %13 = vector.load %arg4[%c0_12, %c0_13] : memref<1x128xf32, #tpu.memory_space<vmem>>, vector<1x128xf32>
      %14 = vector.broadcast %13 : vector<1x128xf32> to vector<512x128xf32>
      %15 = arith.mulf %12, %14 : vector<512x128xf32>
      %c0_14 = arith.constant 0 : index
      %c0_15 = arith.constant 0 : index
      %16 = vector.load %arg5[%c0_14, %c0_15] : memref<1x128xf32, #tpu.memory_space<vmem>>, vector<1x128xf32>
      %17 = vector.broadcast %16 : vector<1x128xf32> to vector<512x128xf32>
      %18 = arith.addf %15, %17 : vector<512x128xf32>
      %cst_16 = arith.constant 0.000000e+00 : f32
      %19 = vector.broadcast %cst_16 : f32 to vector<512x128xf32>
      %20 = arith.maximumf %18, %19 : vector<512x128xf32>
      %21 = arith.truncf %20 : vector<512x128xf32> to vector<512x128xbf16>
      %c0_17 = arith.constant 0 : index
      %c0_18 = arith.constant 0 : index
      %22 = vector.load %arg6[%c0_17, %c0_18] : memref<512x128xbf16, #tpu.memory_space<vmem>>, vector<512x128xbf16>
      tpu.vector_store %arg6[%c0_17, %c0_18], %21 {strides = array<i32>} : memref<512x128xbf16, #tpu.memory_space<vmem>>, vector<512x128xbf16>,
    } else {
    }
    return
  }
  func.func @transform_0(%arg0: i32, %arg1: i32) -> (i32, i32) {
    %c0_i32 = arith.constant 0 : i32
    return %arg0, %arg1 : i32, i32
  }
  func.func @transform_1(%arg0: i32, %arg1: i32) -> (i32, i32) {
    %c0_i32 = arith.constant 0 : i32
    %c0_i32_0 = arith.constant 0 : i32
    return %arg1, %c0_i32 : i32, i32
  }
  func.func @transform_2(%arg0: i32, %arg1: i32) -> (i32, i32) {
    %c0_i32 = arith.constant 0 : i32
    %c0_i32_0 = arith.constant 0 : i32
    %c0_i32_1 = arith.constant 0 : i32
    return %c0_i32, %c0_i32_0 : i32, i32
  }
  func.func @transform_3(%arg0: i32, %arg1: i32) -> (i32, i32) {
    %c0_i32 = arith.constant 0 : i32
    %c0_i32_0 = arith.constant 0 : i32
    %c0_i32_1 = arith.constant 0 : i32
    return %c0_i32, %c0_i32_0 : i32, i32
  }
  func.func @transform_4(%arg0: i32, %arg1: i32) -> (i32, i32) {
    %c0_i32 = arith.constant 0 : i32
    %c0_i32_0 = arith.constant 0 : i32
    return %arg0, %c0_i32 : i32, i32
  }
}

module attributes {stable_mosaic.version = 11 : i64} {
  func.func @_matmul_bn_relu_kernel(%arg0: i32, %arg1: i32, %arg2: memref<128x384xbf16, #tpu.memory_space<vmem>>, %arg3: memref<384x128xbf16, #tpu.memory_space<vmem>>, %arg4: memref<1x128xf32, #tpu.memory_space<vmem>>, %arg5: memref<1x128xf32, #tpu.memory_space<vmem>>, %arg6: memref<128x128xbf16, #tpu.memory_space<vmem>>, %arg7: memref<128x128xf32, #tpu.memory_space<vmem>>) attributes {dimension_semantics = [#tpu.dimension_semantics<parallel>, #tpu.dimension_semantics<arbitrary>], iteration_bounds = array<i64: 1, 3>, scalar_prefetch = 0 : i64, scratch_operands = 1 : i64, tpu.core_type = #tpu.core_type<tc>, window_params = [{transform_indices = @transform_0, window_bounds = array<i64: 128, 384>}, {transform_indices = @transform_1, window_bounds = array<i64: 384, 128>}, {pipeline_mode = #tpu.pipeline_mode<synchronous>, transform_indices = @transform_2, window_bounds = array<i64: 1, 128>}, {pipeline_mode = #tpu.pipeline_mode<synchronous>, transform_indices = @transform_3, window_bounds = array<i64: 1, 128>}, {transform_indices = @transform_4, window_bounds = array<i64: 128, 128>}]} {
    %c0_i32 = arith.constant 0 : i32
    %0 = arith.cmpi eq, %arg1, %c0_i32 : i32
    %1 = arith.extui %0 : i1 to i32
    %c0_i32_0 = arith.constant 0 : i32
    %2 = arith.cmpi ne, %1, %c0_i32_0 : i32
    scf.if %2 {
      %cst_9 = arith.constant 0.000000e+00 : f32
      %12 = vector.broadcast %cst_9 : f32 to vector<128x128xf32>
      %c0_10 = arith.constant 0 : index
      %c0_11 = arith.constant 0 : index
      %13 = vector.load %arg7[%c0_10, %c0_11] : memref<128x128xf32, #tpu.memory_space<vmem>>, vector<128x128xf32>
      tpu.vector_store %arg7[%c0_10, %c0_11], %12 {strides = array<i32>} : memref<128x128xf32, #tpu.memory_space<vmem>>, vector<128x128xf32>,
    } else {
    }
    %c0 = arith.constant 0 : index
    %c0_1 = arith.constant 0 : index
    %3 = vector.load %arg7[%c0, %c0_1] : memref<128x128xf32, #tpu.memory_space<vmem>>, vector<128x128xf32>
    %c0_2 = arith.constant 0 : index
    %c0_3 = arith.constant 0 : index
    %4 = vector.load %arg2[%c0_2, %c0_3] : memref<128x384xbf16, #tpu.memory_space<vmem>>, vector<128x384xbf16>
    %c0_4 = arith.constant 0 : index
    %c0_5 = arith.constant 0 : index
    %5 = vector.load %arg3[%c0_4, %c0_5] : memref<384x128xbf16, #tpu.memory_space<vmem>>, vector<384x128xbf16>
    %cst = arith.constant dense<0.000000e+00> : vector<128x128xf32>
    %6 = tpu.matmul %4, %5, %cst {dimension_numbers = #tpu.dot_dimension_numbers<[1], [0], [0], [1], [0, 0, 1, 1], [], []>} : vector<128x384xbf16>, vector<384x128xbf16>, vector<128x128xf32> -> vector<128x128xf32>
    %7 = arith.addf %3, %6 : vector<128x128xf32>
    %c0_6 = arith.constant 0 : index
    %c0_7 = arith.constant 0 : index
    %8 = vector.load %arg7[%c0_6, %c0_7] : memref<128x128xf32, #tpu.memory_space<vmem>>, vector<128x128xf32>
    tpu.vector_store %arg7[%c0_6, %c0_7], %7 {strides = array<i32>} : memref<128x128xf32, #tpu.memory_space<vmem>>, vector<128x128xf32>,
    %c2_i32 = arith.constant 2 : i32
    %9 = arith.cmpi eq, %arg1, %c2_i32 : i32
    %10 = arith.extui %9 : i1 to i32
    %c0_i32_8 = arith.constant 0 : i32
    %11 = arith.cmpi ne, %10, %c0_i32_8 : i32
    scf.if %11 {
      %c0_9 = arith.constant 0 : index
      %c0_10 = arith.constant 0 : index
      %12 = vector.load %arg7[%c0_9, %c0_10] : memref<128x128xf32, #tpu.memory_space<vmem>>, vector<128x128xf32>
      %c0_11 = arith.constant 0 : index
      %c0_12 = arith.constant 0 : index
      %13 = vector.load %arg4[%c0_11, %c0_12] : memref<1x128xf32, #tpu.memory_space<vmem>>, vector<1x128xf32>
      %14 = vector.broadcast %13 : vector<1x128xf32> to vector<128x128xf32>
      %15 = arith.mulf %12, %14 : vector<128x128xf32>
      %c0_13 = arith.constant 0 : index
      %c0_14 = arith.constant 0 : index
      %16 = vector.load %arg5[%c0_13, %c0_14] : memref<1x128xf32, #tpu.memory_space<vmem>>, vector<1x128xf32>
      %17 = vector.broadcast %16 : vector<1x128xf32> to vector<128x128xf32>
      %18 = arith.addf %15, %17 : vector<128x128xf32>
      %cst_15 = arith.constant 0.000000e+00 : f32
      %19 = vector.broadcast %cst_15 : f32 to vector<128x128xf32>
      %20 = arith.maximumf %18, %19 : vector<128x128xf32>
      %21 = arith.truncf %20 : vector<128x128xf32> to vector<128x128xbf16>
      %c0_16 = arith.constant 0 : index
      %c0_17 = arith.constant 0 : index
      %22 = vector.load %arg6[%c0_16, %c0_17] : memref<128x128xbf16, #tpu.memory_space<vmem>>, vector<128x128xbf16>
      tpu.vector_store %arg6[%c0_16, %c0_17], %21 {strides = array<i32>} : memref<128x128xbf16, #tpu.memory_space<vmem>>, vector<128x128xbf16>,
    } else {
    }
    return
  }
  func.func @transform_0(%arg0: i32, %arg1: i32) -> (i32, i32) {
    %c0_i32 = arith.constant 0 : i32
    return %arg0, %arg1 : i32, i32
  }
  func.func @transform_1(%arg0: i32, %arg1: i32) -> (i32, i32) {
    %c0_i32 = arith.constant 0 : i32
    %c0_i32_0 = arith.constant 0 : i32
    return %arg1, %c0_i32 : i32, i32
  }
  func.func @transform_2(%arg0: i32, %arg1: i32) -> (i32, i32) {
    %c0_i32 = arith.constant 0 : i32
    %c0_i32_0 = arith.constant 0 : i32
    %c0_i32_1 = arith.constant 0 : i32
    return %c0_i32, %c0_i32_0 : i32, i32
  }
  func.func @transform_3(%arg0: i32, %arg1: i32) -> (i32, i32) {
    %c0_i32 = arith.constant 0 : i32
    %c0_i32_0 = arith.constant 0 : i32
    %c0_i32_1 = arith.constant 0 : i32
    return %c0_i32, %c0_i32_0 : i32, i32
  }
  func.func @transform_4(%arg0: i32, %arg1: i32) -> (i32, i32) {
    %c0_i32 = arith.constant 0 : i32
    %c0_i32_0 = arith.constant 0 : i32
    return %arg0, %c0_i32 : i32, i32
  }
}

module attributes {stable_mosaic.version = 11 : i64} {
  func.func @_conv3_proj_add_relu_kernel(%arg0: i32, %arg1: memref<128x128xbf16, #tpu.memory_space<vmem>>, %arg2: memref<128x128xbf16, #tpu.memory_space<vmem>>, %arg3: memref<1x128xf32, #tpu.memory_space<vmem>>, %arg4: memref<1x128xf32, #tpu.memory_space<vmem>>, %arg5: memref<128x128xbf16, #tpu.memory_space<vmem>>, %arg6: memref<128x128xbf16, #tpu.memory_space<vmem>>, %arg7: memref<1x128xf32, #tpu.memory_space<vmem>>, %arg8: memref<1x128xf32, #tpu.memory_space<vmem>>, %arg9: memref<128x128xf32, #tpu.memory_space<vmem>>) attributes {dimension_semantics = [#tpu.dimension_semantics<parallel>], iteration_bounds = array<i64: 1>, scalar_prefetch = 0 : i64, scratch_operands = 0 : i64, tpu.core_type = #tpu.core_type<tc>, window_params = [{transform_indices = @transform_0, window_bounds = array<i64: 128, 128>}, {pipeline_mode = #tpu.pipeline_mode<synchronous>, transform_indices = @transform_1, window_bounds = array<i64: 128, 128>}, {pipeline_mode = #tpu.pipeline_mode<synchronous>, transform_indices = @transform_2, window_bounds = array<i64: 1, 128>}, {pipeline_mode = #tpu.pipeline_mode<synchronous>, transform_indices = @transform_3, window_bounds = array<i64: 1, 128>}, {transform_indices = @transform_4, window_bounds = array<i64: 128, 128>}, {pipeline_mode = #tpu.pipeline_mode<synchronous>, transform_indices = @transform_5, window_bounds = array<i64: 128, 128>}, {pipeline_mode = #tpu.pipeline_mode<synchronous>, transform_indices = @transform_6, window_bounds = array<i64: 1, 128>}, {pipeline_mode = #tpu.pipeline_mode<synchronous>, transform_indices = @transform_7, window_bounds = array<i64: 1, 128>}, {transform_indices = @transform_8, window_bounds = array<i64: 128, 128>}]} {
    %c0 = arith.constant 0 : index
    %c0_0 = arith.constant 0 : index
    %0 = vector.load %arg1[%c0, %c0_0] : memref<128x128xbf16, #tpu.memory_space<vmem>>, vector<128x128xbf16>
    %c0_1 = arith.constant 0 : index
    %c0_2 = arith.constant 0 : index
    %1 = vector.load %arg2[%c0_1, %c0_2] : memref<128x128xbf16, #tpu.memory_space<vmem>>, vector<128x128xbf16>
    %cst = arith.constant dense<0.000000e+00> : vector<128x128xf32>
    %2 = tpu.matmul %0, %1, %cst {dimension_numbers = #tpu.dot_dimension_numbers<[1], [0], [0], [1], [0, 0, 1, 1], [], []>} : vector<128x128xbf16>, vector<128x128xbf16>, vector<128x128xf32> -> vector<128x128xf32>
    %c0_3 = arith.constant 0 : index
    %c0_4 = arith.constant 0 : index
    %3 = vector.load %arg3[%c0_3, %c0_4] : memref<1x128xf32, #tpu.memory_space<vmem>>, vector<1x128xf32>
    %4 = vector.broadcast %3 : vector<1x128xf32> to vector<128x128xf32>
    %5 = arith.mulf %2, %4 : vector<128x128xf32>
    %c0_5 = arith.constant 0 : index
    %c0_6 = arith.constant 0 : index
    %6 = vector.load %arg4[%c0_5, %c0_6] : memref<1x128xf32, #tpu.memory_space<vmem>>, vector<1x128xf32>
    %7 = vector.broadcast %6 : vector<1x128xf32> to vector<128x128xf32>
    %8 = arith.addf %5, %7 : vector<128x128xf32>
    %cst_7 = arith.constant 0.000000e+00 : f32
    %9 = vector.broadcast %cst_7 : f32 to vector<128x128xf32>
    %10 = arith.maximumf %8, %9 : vector<128x128xf32>
    %c0_8 = arith.constant 0 : index
    %c0_9 = arith.constant 0 : index
    %11 = vector.load %arg5[%c0_8, %c0_9] : memref<128x128xbf16, #tpu.memory_space<vmem>>, vector<128x128xbf16>
    %c0_10 = arith.constant 0 : index
    %c0_11 = arith.constant 0 : index
    %12 = vector.load %arg6[%c0_10, %c0_11] : memref<128x128xbf16, #tpu.memory_space<vmem>>, vector<128x128xbf16>
    %cst_12 = arith.constant dense<0.000000e+00> : vector<128x128xf32>
    %13 = tpu.matmul %11, %12, %cst_12 {dimension_numbers = #tpu.dot_dimension_numbers<[1], [0], [0], [1], [0, 0, 1, 1], [], []>} : vector<128x128xbf16>, vector<128x128xbf16>, vector<128x128xf32> -> vector<128x128xf32>
    %c0_13 = arith.constant 0 : index
    %c0_14 = arith.constant 0 : index
    %14 = vector.load %arg7[%c0_13, %c0_14] : memref<1x128xf32, #tpu.memory_space<vmem>>, vector<1x128xf32>
    %15 = vector.broadcast %14 : vector<1x128xf32> to vector<128x128xf32>
    %16 = arith.mulf %13, %15 : vector<128x128xf32>
    %c0_15 = arith.constant 0 : index
    %c0_16 = arith.constant 0 : index
    %17 = vector.load %arg8[%c0_15, %c0_16] : memref<1x128xf32, #tpu.memory_space<vmem>>, vector<1x128xf32>
    %18 = vector.broadcast %17 : vector<1x128xf32> to vector<128x128xf32>
    %19 = arith.addf %16, %18 : vector<128x128xf32>
    %cst_17 = arith.constant 0.000000e+00 : f32
    %20 = vector.broadcast %cst_17 : f32 to vector<128x128xf32>
    %21 = arith.maximumf %19, %20 : vector<128x128xf32>
    %22 = arith.addf %10, %21 : vector<128x128xf32>
    %cst_18 = arith.constant 0.000000e+00 : f32
    %23 = vector.broadcast %cst_18 : f32 to vector<128x128xf32>
    %24 = arith.maximumf %22, %23 : vector<128x128xf32>
    %c0_19 = arith.constant 0 : index
    %c0_20 = arith.constant 0 : index
    %25 = vector.load %arg9[%c0_19, %c0_20] : memref<128x128xf32, #tpu.memory_space<vmem>>, vector<128x128xf32>
    tpu.vector_store %arg9[%c0_19, %c0_20], %24 {strides = array<i32>} : memref<128x128xf32, #tpu.memory_space<vmem>>, vector<128x128xf32>,
    return
  }
  func.func @transform_0(%arg0: i32) -> (i32, i32) {
    %c0_i32 = arith.constant 0 : i32
    %c0_i32_0 = arith.constant 0 : i32
    return %arg0, %c0_i32 : i32, i32
  }
  func.func @transform_1(%arg0: i32) -> (i32, i32) {
    %c0_i32 = arith.constant 0 : i32
    %c0_i32_0 = arith.constant 0 : i32
    %c0_i32_1 = arith.constant 0 : i32
    return %c0_i32, %c0_i32_0 : i32, i32
  }
  func.func @transform_2(%arg0: i32) -> (i32, i32) {
    %c0_i32 = arith.constant 0 : i32
    %c0_i32_0 = arith.constant 0 : i32
    %c0_i32_1 = arith.constant 0 : i32
    return %c0_i32, %c0_i32_0 : i32, i32
  }
  func.func @transform_3(%arg0: i32) -> (i32, i32) {
    %c0_i32 = arith.constant 0 : i32
    %c0_i32_0 = arith.constant 0 : i32
    %c0_i32_1 = arith.constant 0 : i32
    return %c0_i32, %c0_i32_0 : i32, i32
  }
  func.func @transform_4(%arg0: i32) -> (i32, i32) {
    %c0_i32 = arith.constant 0 : i32
    %c0_i32_0 = arith.constant 0 : i32
    return %arg0, %c0_i32 : i32, i32
  }
  func.func @transform_5(%arg0: i32) -> (i32, i32) {
    %c0_i32 = arith.constant 0 : i32
    %c0_i32_0 = arith.constant 0 : i32
    %c0_i32_1 = arith.constant 0 : i32
    return %c0_i32, %c0_i32_0 : i32, i32
  }
  func.func @transform_6(%arg0: i32) -> (i32, i32) {
    %c0_i32 = arith.constant 0 : i32
    %c0_i32_0 = arith.constant 0 : i32
    %c0_i32_1 = arith.constant 0 : i32
    return %c0_i32, %c0_i32_0 : i32, i32
  }
  func.func @transform_7(%arg0: i32) -> (i32, i32) {
    %c0_i32 = arith.constant 0 : i32
    %c0_i32_0 = arith.constant 0 : i32
    %c0_i32_1 = arith.constant 0 : i32
    return %c0_i32, %c0_i32_0 : i32, i32
  }
  func.func @transform_8(%arg0: i32) -> (i32, i32) {
    %c0_i32 = arith.constant 0 : i32
    %c0_i32_0 = arith.constant 0 : i32
    return %arg0, %c0_i32 : i32, i32
  }
}

</mosaic_0001>

<bundles_post_ra>
// kernel: bottleneck_forward.3
= control target key start
LH: loop header
LB: loop body
LE: loop exit
PB: predicated region body
PF: predicated region fallthrough
CT: control target
= control target key end

     0   :  { %s1961_s1 = inlined_call_operand.vmem [shape: bf16[128,128], index: 1, kind: input, shape index: {}]   ;;  %s1962_s2 = inlined_call_operand.vmem [shape: f32[1,128], index: 2, kind: input, shape index: {}]   ;;  %s1963_s3 = inlined_call_operand.vmem [shape: f32[1,128], index: 3, kind: input, shape index: {}]   ;;  %s1964_s0 = inlined_call_operand.vmem [shape: bf16[512,128], index: 0, kind: input, shape index: {}]   ;;  %s1965_s4 = inlined_call_operand.vmem [shape: bf16[512,128], index: 4, kind: output, shape index: {}]  }
   0x1   :  { %v1364_v0 = vld [vmem:[%s1961_s1 + $0x38] sm:$0xff]  ;;  %v1363_v1 = vld [vmem:[%s1961_s1 + $0x30] sm:$0xff]  ;;  %v1362_v2 = vld [vmem:[%s1961_s1 + $0x28] sm:$0xff] }
   0x2   :  { %469 = vmatpush.bf16.msra.mxu0 %v1364_v0  ;;  %1556 = vmatpush.bf16.msra.mxu1 %v1364_v0  ;;  %v1361_v3 = vld [vmem:[%s1961_s1 + $0x20] sm:$0xff]  ;;  %v1360_v4 = vld [vmem:[%s1961_s1 + $0x18] sm:$0xff]  ;;  %v1359_v5 = vld [vmem:[%s1961_s1 + $0x10] sm:$0xff] }
   0x3   :  { %1557 = vmatpush.bf16.msra.mxu2 %v1364_v0  ;;  %1558 = vmatpush.bf16.msra.mxu3 %v1364_v0  ;;  %v1358_v6 = vld [vmem:[%s1961_s1 + $0x8] sm:$0xff]  ;;  %v1357_v7 = vld [vmem:[%s1961_s1] sm:$0xff]  ;;  %v1327_v16 = vld [vmem:[%s1964_s0 + $0x10] sm:$0xff] }
   0x4   :  { %v1325_v8 = vld [vmem:[%s1964_s0] sm:$0xff]  ;;  %v1326_v12 = vld [vmem:[%s1964_s0 + $0x8] sm:$0xff]  ;;  %v1335_v17 = vld [vmem:[%s1964_s0 + $0x50] sm:$0xff] }
   0x5   :  { %v1333_v9 = vld [vmem:[%s1964_s0 + $0x40] sm:$0xff]  ;;  %v1334_v13 = vld [vmem:[%s1964_s0 + $0x48] sm:$0xff]  ;;  %v1343_v18 = vld [vmem:[%s1964_s0 + $0x90] sm:$0xff] }
   0x6   :  { %470 = vmatpush.bf16.msra.mxu0 %v1363_v1  ;;  %1559 = vmatpush.bf16.msra.mxu1 %v1363_v1  ;;  %v1341_v10 = vld [vmem:[%s1964_s0 + $0x80] sm:$0xff]  ;;  %v1342_v14 = vld [vmem:[%s1964_s0 + $0x88] sm:$0xff]  ;;  %v1351_v19 = vld [vmem:[%s1964_s0 + $0xd0] sm:$0xff] }
   0x7   :  { %1560 = vmatpush.bf16.msra.mxu2 %v1363_v1  ;;  %1561 = vmatpush.bf16.msra.mxu3 %v1363_v1  ;;  %v1349_v11 = vld [vmem:[%s1964_s0 + $0xc0] sm:$0xff]  ;;  %v1350_v15 = vld [vmem:[%s1964_s0 + $0xc8] sm:$0xff]  ;;  %v1328_v20 = vld [vmem:[%s1964_s0 + $0x18] sm:$0xff] }
   0x8   :  { %v1336_v21 = vld [vmem:[%s1964_s0 + $0x58] sm:$0xff]  ;;  %v1329_v24 = vld [vmem:[%s1964_s0 + $0x20] sm:$0xff]  ;;  %v1330_v28 = vld [vmem:[%s1964_s0 + $0x28] sm:$0xff] }
   0x9   :  { %v1344_v22 = vld [vmem:[%s1964_s0 + $0x98] sm:$0xff]  ;;  %v1337_v25 = vld [vmem:[%s1964_s0 + $0x60] sm:$0xff]  ;;  %v1338_v29 = vld [vmem:[%s1964_s0 + $0x68] sm:$0xff] }
   0xa   :  { %471 = vmatpush.bf16.msra.mxu0 %v1362_v2  ;;  %1562 = vmatpush.bf16.msra.mxu1 %v1362_v2  ;;  %v1352_v23 = vld [vmem:[%s1964_s0 + $0xd8] sm:$0xff]  ;;  %v1345_v26 = vld [vmem:[%s1964_s0 + $0xa0] sm:$0xff]  ;;  %v1346_v30 = vld [vmem:[%s1964_s0 + $0xa8] sm:$0xff] }
   0xb   :  { %1563 = vmatpush.bf16.msra.mxu2 %v1362_v2  ;;  %1564 = vmatpush.bf16.msra.mxu3 %v1362_v2  ;;  %v1353_v27 = vld [vmem:[%s1964_s0 + $0xe0] sm:$0xff]  ;;  %v1354_v31 = vld [vmem:[%s1964_s0 + $0xe8] sm:$0xff]  ;;  %v1331_v32 = vld [vmem:[%s1964_s0 + $0x30] sm:$0xff] }
   0xc   :  { %v1339_v33 = vld [vmem:[%s1964_s0 + $0x70] sm:$0xff]  ;;  %v1332_v36 = vld [vmem:[%s1964_s0 + $0x38] sm:$0xff]  ;;  %v1730_v42 = vld [vmem:[%s1962_s2] ss:$0 sm:$0xff] }
   0xd   :  { %v1347_v34 = vld [vmem:[%s1964_s0 + $0xb0] sm:$0xff]  ;;  %v1340_v37 = vld [vmem:[%s1964_s0 + $0x78] sm:$0xff]  ;;  %v1736_v44 = vld [vmem:[%s1963_s3] ss:$0 sm:$0xff] }
   0xe   :  { %472 = vmatpush.bf16.msra.mxu0 %v1361_v3  ;;  %1565 = vmatpush.bf16.msra.mxu1 %v1361_v3  ;;  %v1355_v35 = vld [vmem:[%s1964_s0 + $0xf0] sm:$0xff]  ;;  %v1348_v38 = vld [vmem:[%s1964_s0 + $0xb8] sm:$0xff] }
   0xf   :  { %1566 = vmatpush.bf16.msra.mxu2 %v1361_v3  ;;  %1567 = vmatpush.bf16.msra.mxu3 %v1361_v3  ;;  %v1356_v39 = vld [vmem:[%s1964_s0 + $0xf8] sm:$0xff] }
  0x12   :  { %473 = vmatpush.bf16.msra.mxu0 %v1360_v4  ;;  %1568 = vmatpush.bf16.msra.mxu1 %v1360_v4 }
  0x13   :  { %1569 = vmatpush.bf16.msra.mxu2 %v1360_v4  ;;  %1570 = vmatpush.bf16.msra.mxu3 %v1360_v4 }
  0x16   :  { %474 = vmatpush.bf16.msra.mxu0 %v1359_v5  ;;  %1571 = vmatpush.bf16.msra.mxu1 %v1359_v5 }
  0x17   :  { %1572 = vmatpush.bf16.msra.mxu2 %v1359_v5  ;;  %1573 = vmatpush.bf16.msra.mxu3 %v1359_v5 }
  0x1a   :  { %475 = vmatpush.bf16.msra.mxu0 %v1358_v6  ;;  %1574 = vmatpush.bf16.msra.mxu1 %v1358_v6 }
  0x1b   :  { %1575 = vmatpush.bf16.msra.mxu2 %v1358_v6  ;;  %1576 = vmatpush.bf16.msra.mxu3 %v1358_v6 }
  0x1e   :  { %476 = vmatpush.bf16.msra.mxu0 %v1357_v7  ;;  %1577 = vmatpush.bf16.msra.mxu1 %v1357_v7 }
  0x1f   :  { %1578 = vmatpush.bf16.msra.mxu2 %v1357_v7  ;;  %1579 = vmatpush.bf16.msra.mxu3 %v1357_v7 }
  0x21   :  { %477 = vmatmul.bf16.vlgmr.msra.gmra.mxu0 %v1325_v8  ;;  %517 = vmatmul.bf16.vlgmr.msra.gmra.mxu1 %v1333_v9 }
  0x22   :  { %557 = vmatmul.bf16.vlgmr.msra.gmra.mxu2 %v1341_v10  ;;  %597 = vmatmul.bf16.vlgmr.msra.gmra.mxu3 %v1349_v11 }
  0x31   :  { %482 = vmatmul.bf16.gmra.mxu0 %v1326_v12  ;;  %522 = vmatmul.bf16.gmra.mxu1 %v1334_v13 }
  0x32   :  { %562 = vmatmul.bf16.gmra.mxu2 %v1342_v14  ;;  %602 = vmatmul.bf16.gmra.mxu3 %v1350_v15 }
  0x41   :  { %487 = vmatmul.bf16.gmra.mxu0 %v1327_v16  ;;  %527 = vmatmul.bf16.gmra.mxu1 %v1335_v17 }
  0x42   :  { %567 = vmatmul.bf16.gmra.mxu2 %v1343_v18  ;;  %607 = vmatmul.bf16.gmra.mxu3 %v1351_v19 }
  0x51   :  { %492 = vmatmul.bf16.gmra.mxu0 %v1328_v20  ;;  %532 = vmatmul.bf16.gmra.mxu1 %v1336_v21 }
  0x52   :  { %572 = vmatmul.bf16.gmra.mxu2 %v1344_v22  ;;  %612 = vmatmul.bf16.gmra.mxu3 %v1352_v23 }
  0x61   :  { %497 = vmatmul.bf16.gmra.mxu0 %v1329_v24  ;;  %537 = vmatmul.bf16.gmra.mxu1 %v1337_v25 }
  0x62   :  { %577 = vmatmul.bf16.gmra.mxu2 %v1345_v26  ;;  %617 = vmatmul.bf16.gmra.mxu3 %v1353_v27 }
  0x71   :  { %502 = vmatmul.bf16.gmra.mxu0 %v1330_v28  ;;  %542 = vmatmul.bf16.gmra.mxu1 %v1338_v29 }
  0x72   :  { %582 = vmatmul.bf16.gmra.mxu2 %v1346_v30  ;;  %622 = vmatmul.bf16.gmra.mxu3 %v1354_v31 }
  0x81   :  { %507 = vmatmul.bf16.gmra.mxu0 %v1331_v32  ;;  %547 = vmatmul.bf16.gmra.mxu1 %v1339_v33 }
  0x82   :  { %587 = vmatmul.bf16.gmra.mxu2 %v1347_v34  ;;  %627 = vmatmul.bf16.gmra.mxu3 %v1355_v35 }
  0x91   :  { %512 = vmatmul.bf16.gmra.mxu0 %v1332_v36  ;;  %552 = vmatmul.bf16.gmra.mxu1 %v1340_v37 }
  0x92   :  { %592 = vmatmul.bf16.gmra.mxu2 %v1348_v38  ;;  %632 = vmatmul.bf16.gmra.mxu3 %v1356_v39 }
  0x9e   :  { %v478_v40 = vpop.f32.mrf.mxu0  ;;  %v518_v41 = vpop.f32.mrf.mxu1 }
  0x9f   :  { %v837_v43 = vmul.f32 %v1730_v42, %v478_v40  ;;  %v853_v45 = vmul.f32 %v1730_v42, %v518_v41 }
  0xa1   :  { %v905_v50 = vadd.f32 %v1736_v44, %v837_v43  ;;  %v921_v51 = vadd.f32 %v1736_v44, %v853_v45 }
  0xa3   :  { %v969_v58 = vmax.f32 %v905_v50, 0.0  ;;  %v985_v59 = vmax.f32 %v921_v51, 0.0 }
  0xa5   :  { %v558_v46 = vpop.f32.mrf.mxu2  ;;  %v598_v47 = vpop.f32.mrf.mxu3 }
  0xa6   :  { %v480_v48 = vpop.f32.mrf.mxu0  ;;  %v520_v49 = vpop.f32.mrf.mxu1  ;;  %v869_v56 = vmul.f32 %v1730_v42, %v558_v46  ;;  %v885_v57 = vmul.f32 %v1730_v42, %v598_v47 }
  0xa7   :  { %v838_v52 = vmul.f32 %v1730_v42, %v480_v48  ;;  %v854_v53 = vmul.f32 %v1730_v42, %v520_v49 }
  0xa8   :  { %v937_v2 = vadd.f32 %v1736_v44, %v869_v56  ;;  %v953_v3 = vadd.f32 %v1736_v44, %v885_v57 }
  0xa9   :  { %v906_v54 = vadd.f32 %v1736_v44, %v838_v52  ;;  %v922_v55 = vadd.f32 %v1736_v44, %v854_v53 }
  0xaa   :  { %v1001_v10 = vmax.f32 %v937_v2, 0.0  ;;  %v1017_v11 = vmax.f32 %v953_v3, 0.0 }
  0xab   :  { %v970_v60 = vmax.f32 %v906_v54, 0.0  ;;  %v986_v61 = vmax.f32 %v922_v55, 0.0 }
  0xad   :  { %v1368_v62 = vpack.c.bf16 %v970_v60, %v969_v58  ;;  %v1408_v63 = vpack.c.bf16 %v986_v61, %v985_v59  ;;  %v560_v0 = vpop.f32.mrf.mxu2  ;;  %v600_v1 = vpop.f32.mrf.mxu3 }
  0xae   :  { %v870_v4 = vmul.f32 %v1730_v42, %v560_v0  ;;  %v886_v5 = vmul.f32 %v1730_v42, %v600_v1  ;;  %v483_v6 = vpop.f32.mrf.mxu0  ;;  %v523_v7 = vpop.f32.mrf.mxu1 }
  0xaf   :  { %1369 = vst [vmem:[%s1965_s4] sm:$0xff] %v1368_v62   ;;  %v839_v14 = vmul.f32 %v1730_v42, %v483_v6  ;;  %v855_v15 = vmul.f32 %v1730_v42, %v523_v7 }
  0xb0   :  { %1532 = vst [vmem:[%s1965_s4 + $0x40] sm:$0xff] %v1408_v63   ;;  %v938_v8 = vadd.f32 %v1736_v44, %v870_v4  ;;  %v954_v9 = vadd.f32 %v1736_v44, %v886_v5 }
  0xb1   :  { %v907_v22 = vadd.f32 %v1736_v44, %v839_v14  ;;  %v923_v23 = vadd.f32 %v1736_v44, %v855_v15 }
  0xb2   :  { %v1002_v12 = vmax.f32 %v938_v8, 0.0  ;;  %v1018_v13 = vmax.f32 %v954_v9, 0.0 }
  0xb3   :  { %v971_v30 = vmax.f32 %v907_v22, 0.0  ;;  %v987_v31 = vmax.f32 %v923_v23, 0.0 }
  0xb4   :  { %v1448_v16 = vpack.c.bf16 %v1002_v12, %v1001_v10  ;;  %v1488_v17 = vpack.c.bf16 %v1018_v13, %v1017_v11 }
  0xb5   :  { %v563_v18 = vpop.f32.mrf.mxu2  ;;  %v603_v19 = vpop.f32.mrf.mxu3 }
  0xb6   :  { %1540 = vst [vmem:[%s1965_s4 + $0x80] sm:$0xff] %v1448_v16   ;;  %v485_v20 = vpop.f32.mrf.mxu0  ;;  %v525_v21 = vpop.f32.mrf.mxu1  ;;  %v871_v28 = vmul.f32 %v1730_v42, %v563_v18  ;;  %v887_v29 = vmul.f32 %v1730_v42, %v603_v19 }
  0xb7   :  { %1548 = vst [vmem:[%s1965_s4 + $0xc0] sm:$0xff] %v1488_v17   ;;  %v840_v24 = vmul.f32 %v1730_v42, %v485_v20  ;;  %v856_v25 = vmul.f32 %v1730_v42, %v525_v21 }
  0xb8   :  { %v939_v38 = vadd.f32 %v1736_v44, %v871_v28  ;;  %v955_v39 = vadd.f32 %v1736_v44, %v887_v29 }
  0xb9   :  { %v908_v26 = vadd.f32 %v1736_v44, %v840_v24  ;;  %v924_v27 = vadd.f32 %v1736_v44, %v856_v25 }
  0xba   :  { %v1003_v48 = vmax.f32 %v939_v38, 0.0  ;;  %v1019_v49 = vmax.f32 %v955_v39, 0.0 }
  0xbb   :  { %v972_v32 = vmax.f32 %v908_v26, 0.0  ;;  %v988_v33 = vmax.f32 %v924_v27, 0.0 }
  0xbd   :  { %v1373_v34 = vpack.c.bf16 %v972_v32, %v971_v30  ;;  %v1413_v35 = vpack.c.bf16 %v988_v33, %v987_v31  ;;  %v565_v36 = vpop.f32.mrf.mxu2  ;;  %v605_v37 = vpop.f32.mrf.mxu3 }
  0xbe   :  { %v872_v40 = vmul.f32 %v1730_v42, %v565_v36  ;;  %v888_v41 = vmul.f32 %v1730_v42, %v605_v37  ;;  %v488_v43 = vpop.f32.mrf.mxu0  ;;  %v528_v45 = vpop.f32.mrf.mxu1 }
  0xbf   :  { %1525 = vst [vmem:[%s1965_s4 + $0x8] sm:$0xff] %v1373_v34   ;;  %v841_v52 = vmul.f32 %v1730_v42, %v488_v43  ;;  %v857_v53 = vmul.f32 %v1730_v42, %v528_v45 }
  0xc0   :  { %1533 = vst [vmem:[%s1965_s4 + $0x48] sm:$0xff] %v1413_v35   ;;  %v940_v46 = vadd.f32 %v1736_v44, %v872_v40  ;;  %v956_v47 = vadd.f32 %v1736_v44, %v888_v41 }
  0xc1   :  { %v909_v60 = vadd.f32 %v1736_v44, %v841_v52  ;;  %v925_v61 = vadd.f32 %v1736_v44, %v857_v53 }
  0xc2   :  { %v1004_v50 = vmax.f32 %v940_v46, 0.0  ;;  %v1020_v51 = vmax.f32 %v956_v47, 0.0 }
  0xc3   :  { %v973_v4 = vmax.f32 %v909_v60, 0.0  ;;  %v989_v5 = vmax.f32 %v925_v61, 0.0 }
  0xc4   :  { %v1453_v54 = vpack.c.bf16 %v1004_v50, %v1003_v48  ;;  %v1493_v55 = vpack.c.bf16 %v1020_v51, %v1019_v49 }
  0xc5   :  { %v568_v56 = vpop.f32.mrf.mxu2  ;;  %v608_v57 = vpop.f32.mrf.mxu3 }
  0xc6   :  { %1541 = vst [vmem:[%s1965_s4 + $0x88] sm:$0xff] %v1453_v54   ;;  %v490_v58 = vpop.f32.mrf.mxu0  ;;  %v530_v59 = vpop.f32.mrf.mxu1  ;;  %v873_v2 = vmul.f32 %v1730_v42, %v568_v56  ;;  %v889_v3 = vmul.f32 %v1730_v42, %v608_v57 }
  0xc7   :  { %1549 = vst [vmem:[%s1965_s4 + $0xc8] sm:$0xff] %v1493_v55   ;;  %v842_v62 = vmul.f32 %v1730_v42, %v490_v58  ;;  %v858_v63 = vmul.f32 %v1730_v42, %v530_v59 }
  0xc8   :  { %v941_v12 = vadd.f32 %v1736_v44, %v873_v2  ;;  %v957_v13 = vadd.f32 %v1736_v44, %v889_v3 }
  0xc9   :  { %v910_v0 = vadd.f32 %v1736_v44, %v842_v62  ;;  %v926_v1 = vadd.f32 %v1736_v44, %v858_v63 }
  0xca   :  { %v1005_v20 = vmax.f32 %v941_v12, 0.0  ;;  %v1021_v21 = vmax.f32 %v957_v13, 0.0 }
  0xcb   :  { %v974_v6 = vmax.f32 %v910_v0, 0.0  ;;  %v990_v7 = vmax.f32 %v926_v1, 0.0 }
  0xcd   :  { %v1378_v8 = vpack.c.bf16 %v974_v6, %v973_v4  ;;  %v1418_v9 = vpack.c.bf16 %v990_v7, %v989_v5  ;;  %v570_v10 = vpop.f32.mrf.mxu2  ;;  %v610_v11 = vpop.f32.mrf.mxu3 }
  0xce   :  { %v874_v14 = vmul.f32 %v1730_v42, %v570_v10  ;;  %v890_v15 = vmul.f32 %v1730_v42, %v610_v11  ;;  %v493_v16 = vpop.f32.mrf.mxu0  ;;  %v533_v17 = vpop.f32.mrf.mxu1 }
  0xcf   :  { %1526 = vst [vmem:[%s1965_s4 + $0x10] sm:$0xff] %v1378_v8   ;;  %v843_v24 = vmul.f32 %v1730_v42, %v493_v16  ;;  %v859_v25 = vmul.f32 %v1730_v42, %v533_v17 }
  0xd0   :  { %1534 = vst [vmem:[%s1965_s4 + $0x50] sm:$0xff] %v1418_v9   ;;  %v942_v18 = vadd.f32 %v1736_v44, %v874_v14  ;;  %v958_v19 = vadd.f32 %v1736_v44, %v890_v15 }
  0xd1   :  { %v911_v32 = vadd.f32 %v1736_v44, %v843_v24  ;;  %v927_v33 = vadd.f32 %v1736_v44, %v859_v25 }
  0xd2   :  { %v1006_v22 = vmax.f32 %v942_v18, 0.0  ;;  %v1022_v23 = vmax.f32 %v958_v19, 0.0 }
  0xd3   :  { %v975_v40 = vmax.f32 %v911_v32, 0.0  ;;  %v991_v41 = vmax.f32 %v927_v33, 0.0 }
  0xd4   :  { %v1458_v26 = vpack.c.bf16 %v1006_v22, %v1005_v20  ;;  %v1498_v27 = vpack.c.bf16 %v1022_v23, %v1021_v21 }
  0xd5   :  { %v573_v28 = vpop.f32.mrf.mxu2  ;;  %v613_v29 = vpop.f32.mrf.mxu3 }
  0xd6   :  { %1542 = vst [vmem:[%s1965_s4 + $0x90] sm:$0xff] %v1458_v26   ;;  %v495_v30 = vpop.f32.mrf.mxu0  ;;  %v535_v31 = vpop.f32.mrf.mxu1  ;;  %v875_v38 = vmul.f32 %v1730_v42, %v573_v28  ;;  %v891_v39 = vmul.f32 %v1730_v42, %v613_v29 }
  0xd7   :  { %1550 = vst [vmem:[%s1965_s4 + $0xd0] sm:$0xff] %v1498_v27   ;;  %v844_v34 = vmul.f32 %v1730_v42, %v495_v30  ;;  %v860_v35 = vmul.f32 %v1730_v42, %v535_v31 }
  0xd8   :  { %v943_v50 = vadd.f32 %v1736_v44, %v875_v38  ;;  %v959_v51 = vadd.f32 %v1736_v44, %v891_v39 }
  0xd9   :  { %v912_v36 = vadd.f32 %v1736_v44, %v844_v34  ;;  %v928_v37 = vadd.f32 %v1736_v44, %v860_v35 }
  0xda   :  { %v1007_v58 = vmax.f32 %v943_v50, 0.0  ;;  %v1023_v59 = vmax.f32 %v959_v51, 0.0 }
  0xdb   :  { %v976_v43 = vmax.f32 %v912_v36, 0.0  ;;  %v992_v45 = vmax.f32 %v928_v37, 0.0 }
  0xdd   :  { %v1383_v46 = vpack.c.bf16 %v976_v43, %v975_v40  ;;  %v1423_v47 = vpack.c.bf16 %v992_v45, %v991_v41  ;;  %v575_v48 = vpop.f32.mrf.mxu2  ;;  %v615_v49 = vpop.f32.mrf.mxu3 }
  0xde   :  { %v876_v52 = vmul.f32 %v1730_v42, %v575_v48  ;;  %v892_v53 = vmul.f32 %v1730_v42, %v615_v49  ;;  %v498_v54 = vpop.f32.mrf.mxu0  ;;  %v538_v55 = vpop.f32.mrf.mxu1 }
  0xdf   :  { %1527 = vst [vmem:[%s1965_s4 + $0x18] sm:$0xff] %v1383_v46   ;;  %v845_v62 = vmul.f32 %v1730_v42, %v498_v54  ;;  %v861_v63 = vmul.f32 %v1730_v42, %v538_v55 }
  0xe0   :  { %1535 = vst [vmem:[%s1965_s4 + $0x58] sm:$0xff] %v1423_v47   ;;  %v944_v56 = vadd.f32 %v1736_v44, %v876_v52  ;;  %v960_v57 = vadd.f32 %v1736_v44, %v892_v53 }
  0xe1   :  { %v913_v6 = vadd.f32 %v1736_v44, %v845_v62  ;;  %v929_v7 = vadd.f32 %v1736_v44, %v861_v63 }
  0xe2   :  { %v1008_v60 = vmax.f32 %v944_v56, 0.0  ;;  %v1024_v61 = vmax.f32 %v960_v57, 0.0 }
  0xe3   :  { %v977_v14 = vmax.f32 %v913_v6, 0.0  ;;  %v993_v15 = vmax.f32 %v929_v7, 0.0 }
  0xe4   :  { %v1463_v0 = vpack.c.bf16 %v1008_v60, %v1007_v58  ;;  %v1503_v1 = vpack.c.bf16 %v1024_v61, %v1023_v59 }
  0xe5   :  { %v578_v2 = vpop.f32.mrf.mxu2  ;;  %v618_v3 = vpop.f32.mrf.mxu3 }
  0xe6   :  { %1543 = vst [vmem:[%s1965_s4 + $0x98] sm:$0xff] %v1463_v0   ;;  %v500_v4 = vpop.f32.mrf.mxu0  ;;  %v540_v5 = vpop.f32.mrf.mxu1  ;;  %v877_v12 = vmul.f32 %v1730_v42, %v578_v2  ;;  %v893_v13 = vmul.f32 %v1730_v42, %v618_v3 }
  0xe7   :  { %1551 = vst [vmem:[%s1965_s4 + $0xd8] sm:$0xff] %v1503_v1   ;;  %v846_v8 = vmul.f32 %v1730_v42, %v500_v4  ;;  %v862_v9 = vmul.f32 %v1730_v42, %v540_v5 }
  0xe8   :  { %v945_v22 = vadd.f32 %v1736_v44, %v877_v12  ;;  %v961_v23 = vadd.f32 %v1736_v44, %v893_v13 }
  0xe9   :  { %v914_v10 = vadd.f32 %v1736_v44, %v846_v8  ;;  %v930_v11 = vadd.f32 %v1736_v44, %v862_v9 }
  0xea   :  { %v1009_v30 = vmax.f32 %v945_v22, 0.0  ;;  %v1025_v31 = vmax.f32 %v961_v23, 0.0 }
  0xeb   :  { %v978_v16 = vmax.f32 %v914_v10, 0.0  ;;  %v994_v17 = vmax.f32 %v930_v11, 0.0 }
  0xed   :  { %v1388_v18 = vpack.c.bf16 %v978_v16, %v977_v14  ;;  %v1428_v19 = vpack.c.bf16 %v994_v17, %v993_v15  ;;  %v580_v20 = vpop.f32.mrf.mxu2  ;;  %v620_v21 = vpop.f32.mrf.mxu3 }
  0xee   :  { %v878_v24 = vmul.f32 %v1730_v42, %v580_v20  ;;  %v894_v25 = vmul.f32 %v1730_v42, %v620_v21  ;;  %v503_v26 = vpop.f32.mrf.mxu0  ;;  %v543_v27 = vpop.f32.mrf.mxu1 }
  0xef   :  { %1528 = vst [vmem:[%s1965_s4 + $0x20] sm:$0xff] %v1388_v18   ;;  %v847_v34 = vmul.f32 %v1730_v42, %v503_v26  ;;  %v863_v35 = vmul.f32 %v1730_v42, %v543_v27 }
  0xf0   :  { %1536 = vst [vmem:[%s1965_s4 + $0x60] sm:$0xff] %v1428_v19   ;;  %v946_v28 = vadd.f32 %v1736_v44, %v878_v24  ;;  %v962_v29 = vadd.f32 %v1736_v44, %v894_v25 }
  0xf1   :  { %v915_v43 = vadd.f32 %v1736_v44, %v847_v34  ;;  %v931_v45 = vadd.f32 %v1736_v44, %v863_v35 }
  0xf2   :  { %v1010_v32 = vmax.f32 %v946_v28, 0.0  ;;  %v1026_v33 = vmax.f32 %v962_v29, 0.0 }
  0xf3   :  { %v979_v52 = vmax.f32 %v915_v43, 0.0  ;;  %v995_v53 = vmax.f32 %v931_v45, 0.0 }
  0xf4   :  { %v1468_v36 = vpack.c.bf16 %v1010_v32, %v1009_v30  ;;  %v1508_v37 = vpack.c.bf16 %v1026_v33, %v1025_v31 }
  0xf5   :  { %v583_v38 = vpop.f32.mrf.mxu2  ;;  %v623_v39 = vpop.f32.mrf.mxu3 }
  0xf6   :  { %1544 = vst [vmem:[%s1965_s4 + $0xa0] sm:$0xff] %v1468_v36   ;;  %v505_v40 = vpop.f32.mrf.mxu0  ;;  %v545_v41 = vpop.f32.mrf.mxu1  ;;  %v879_v50 = vmul.f32 %v1730_v42, %v583_v38  ;;  %v895_v51 = vmul.f32 %v1730_v42, %v623_v39 }
  0xf7   :  { %1552 = vst [vmem:[%s1965_s4 + $0xe0] sm:$0xff] %v1508_v37   ;;  %v848_v46 = vmul.f32 %v1730_v42, %v505_v40  ;;  %v864_v47 = vmul.f32 %v1730_v42, %v545_v41 }
  0xf8   :  { %v947_v60 = vadd.f32 %v1736_v44, %v879_v50  ;;  %v963_v61 = vadd.f32 %v1736_v44, %v895_v51 }
  0xf9   :  { %v916_v48 = vadd.f32 %v1736_v44, %v848_v46  ;;  %v932_v49 = vadd.f32 %v1736_v44, %v864_v47 }
  0xfa   :  { %v1011_v4 = vmax.f32 %v947_v60, 0.0  ;;  %v1027_v5 = vmax.f32 %v963_v61, 0.0 }
  0xfb   :  { %v980_v54 = vmax.f32 %v916_v48, 0.0  ;;  %v996_v55 = vmax.f32 %v932_v49, 0.0 }
  0xfd   :  { %v1393_v56 = vpack.c.bf16 %v980_v54, %v979_v52  ;;  %v1433_v57 = vpack.c.bf16 %v996_v55, %v995_v53  ;;  %v585_v58 = vpop.f32.mrf.mxu2  ;;  %v625_v59 = vpop.f32.mrf.mxu3 }
  0xfe   :  { %v880_v62 = vmul.f32 %v1730_v42, %v585_v58  ;;  %v896_v63 = vmul.f32 %v1730_v42, %v625_v59  ;;  %v508_v0 = vpop.f32.mrf.mxu0  ;;  %v548_v1 = vpop.f32.mrf.mxu1 }
  0xff   :  { %1529 = vst [vmem:[%s1965_s4 + $0x28] sm:$0xff] %v1393_v56   ;;  %v849_v8 = vmul.f32 %v1730_v42, %v508_v0  ;;  %v865_v9 = vmul.f32 %v1730_v42, %v548_v1 }
 0x100   :  { %1537 = vst [vmem:[%s1965_s4 + $0x68] sm:$0xff] %v1433_v57   ;;  %v948_v2 = vadd.f32 %v1736_v44, %v880_v62  ;;  %v964_v3 = vadd.f32 %v1736_v44, %v896_v63 }
 0x101   :  { %v917_v16 = vadd.f32 %v1736_v44, %v849_v8  ;;  %v933_v17 = vadd.f32 %v1736_v44, %v865_v9 }
 0x102   :  { %v1012_v6 = vmax.f32 %v948_v2, 0.0  ;;  %v1028_v7 = vmax.f32 %v964_v3, 0.0 }
 0x103   :  { %v981_v24 = vmax.f32 %v917_v16, 0.0  ;;  %v997_v25 = vmax.f32 %v933_v17, 0.0 }
 0x104   :  { %v1473_v10 = vpack.c.bf16 %v1012_v6, %v1011_v4  ;;  %v1513_v11 = vpack.c.bf16 %v1028_v7, %v1027_v5 }
 0x105   :  { %v588_v12 = vpop.f32.mrf.mxu2  ;;  %v628_v13 = vpop.f32.mrf.mxu3 }
 0x106   :  { %1545 = vst [vmem:[%s1965_s4 + $0xa8] sm:$0xff] %v1473_v10   ;;  %v510_v14 = vpop.f32.mrf.mxu0  ;;  %v550_v15 = vpop.f32.mrf.mxu1  ;;  %v881_v22 = vmul.f32 %v1730_v42, %v588_v12  ;;  %v897_v23 = vmul.f32 %v1730_v42, %v628_v13 }
 0x107   :  { %1553 = vst [vmem:[%s1965_s4 + $0xe8] sm:$0xff] %v1513_v11   ;;  %v850_v18 = vmul.f32 %v1730_v42, %v510_v14  ;;  %v866_v19 = vmul.f32 %v1730_v42, %v550_v15 }
 0x108   :  { %v949_v32 = vadd.f32 %v1736_v44, %v881_v22  ;;  %v965_v33 = vadd.f32 %v1736_v44, %v897_v23 }
 0x109   :  { %v918_v20 = vadd.f32 %v1736_v44, %v850_v18  ;;  %v934_v21 = vadd.f32 %v1736_v44, %v866_v19 }
 0x10a   :  { %v1013_v40 = vmax.f32 %v949_v32, 0.0  ;;  %v1029_v41 = vmax.f32 %v965_v33, 0.0 }
 0x10b   :  { %v982_v26 = vmax.f32 %v918_v20, 0.0  ;;  %v998_v27 = vmax.f32 %v934_v21, 0.0 }
 0x10d   :  { %v1398_v28 = vpack.c.bf16 %v982_v26, %v981_v24  ;;  %v1438_v29 = vpack.c.bf16 %v998_v27, %v997_v25  ;;  %v590_v30 = vpop.f32.mrf.mxu2  ;;  %v630_v31 = vpop.f32.mrf.mxu3 }
 0x10e   :  { %v882_v34 = vmul.f32 %v1730_v42, %v590_v30  ;;  %v898_v35 = vmul.f32 %v1730_v42, %v630_v31  ;;  %v513_v36 = vpop.f32.mrf.mxu0  ;;  %v553_v37 = vpop.f32.mrf.mxu1 }
 0x10f   :  { %1530 = vst [vmem:[%s1965_s4 + $0x30] sm:$0xff] %v1398_v28   ;;  %v851_v46 = vmul.f32 %v1730_v42, %v513_v36  ;;  %v867_v47 = vmul.f32 %v1730_v42, %v553_v37 }
 0x110   :  { %1538 = vst [vmem:[%s1965_s4 + $0x70] sm:$0xff] %v1438_v29   ;;  %v950_v38 = vadd.f32 %v1736_v44, %v882_v34  ;;  %v966_v39 = vadd.f32 %v1736_v44, %v898_v35 }
 0x111   :  { %v919_v54 = vadd.f32 %v1736_v44, %v851_v46  ;;  %v935_v55 = vadd.f32 %v1736_v44, %v867_v47 }
 0x112   :  { %v1014_v43 = vmax.f32 %v950_v38, 0.0  ;;  %v1030_v45 = vmax.f32 %v966_v39, 0.0 }
 0x113   :  { %v983_v62 = vmax.f32 %v919_v54, 0.0  ;;  %v999_v63 = vmax.f32 %v935_v55, 0.0 }
 0x114   :  { %v1478_v48 = vpack.c.bf16 %v1014_v43, %v1013_v40  ;;  %v1518_v49 = vpack.c.bf16 %v1030_v45, %v1029_v41 }
 0x115   :  { %v593_v50 = vpop.f32.mrf.mxu2  ;;  %v633_v51 = vpop.f32.mrf.mxu3 }
 0x116   :  { %1546 = vst [vmem:[%s1965_s4 + $0xb0] sm:$0xff] %v1478_v48   ;;  %v515_v52 = vpop.f32.mrf.mxu0  ;;  %v555_v53 = vpop.f32.mrf.mxu1  ;;  %v883_v60 = vmul.f32 %v1730_v42, %v593_v50  ;;  %v899_v61 = vmul.f32 %v1730_v42, %v633_v51 }
 0x117   :  { %1554 = vst [vmem:[%s1965_s4 + $0xf0] sm:$0xff] %v1518_v49   ;;  %v852_v56 = vmul.f32 %v1730_v42, %v515_v52  ;;  %v868_v57 = vmul.f32 %v1730_v42, %v555_v53 }
 0x118   :  { %v951_v6 = vadd.f32 %v1736_v44, %v883_v60  ;;  %v967_v7 = vadd.f32 %v1736_v44, %v899_v61 }
 0x119   :  { %v920_v58 = vadd.f32 %v1736_v44, %v852_v56  ;;  %v936_v59 = vadd.f32 %v1736_v44, %v868_v57 }
 0x11a   :  { %v1015_v12 = vmax.f32 %v951_v6, 0.0  ;;  %v1031_v13 = vmax.f32 %v967_v7, 0.0 }
 0x11b   :  { %v984_v0 = vmax.f32 %v920_v58, 0.0  ;;  %v1000_v1 = vmax.f32 %v936_v59, 0.0 }
 0x11d   :  { %v1403_v2 = vpack.c.bf16 %v984_v0, %v983_v62  ;;  %v1443_v3 = vpack.c.bf16 %v1000_v1, %v999_v63  ;;  %v595_v4 = vpop.f32.mrf.mxu2  ;;  %v635_v5 = vpop.f32.mrf.mxu3 }
 0x11e   :  { %v884_v8 = vmul.f32 %v1730_v42, %v595_v4  ;;  %v900_v9 = vmul.f32 %v1730_v42, %v635_v5 }
 0x11f   :  { %1531 = vst [vmem:[%s1965_s4 + $0x38] sm:$0xff] %v1403_v2  }
 0x120   :  { %1539 = vst [vmem:[%s1965_s4 + $0x78] sm:$0xff] %v1443_v3   ;;  %v952_v10 = vadd.f32 %v1736_v44, %v884_v8  ;;  %v968_v11 = vadd.f32 %v1736_v44, %v900_v9 }
 0x122   :  { %v1016_v14 = vmax.f32 %v952_v10, 0.0  ;;  %v1032_v15 = vmax.f32 %v968_v11, 0.0 }
 0x124   :  { %v1483_v16 = vpack.c.bf16 %v1016_v14, %v1015_v12  ;;  %v1523_v17 = vpack.c.bf16 %v1032_v15, %v1031_v13 }
 0x126   :  { %1547 = vst [vmem:[%s1965_s4 + $0xb8] sm:$0xff] %v1483_v16  }
 0x127   :  { %1555 = vst [vmem:[%s1965_s4 + $0xf8] sm:$0xff] %v1523_v17  }

// kernel: bottleneck_forward.4
= control target key start
LH: loop header
LB: loop body
LE: loop exit
PB: predicated region body
PF: predicated region fallthrough
CT: control target
= control target key end

     0   :  { %s1561_s15 = smov 0   ;;  %s1563_s16 = smov 0   ;;  %s1872_s0 = inlined_call_operand.vmem [shape: bf16[128,1152], index: 0, kind: input, shape index: {}]   ;;  %s1873_s1 = inlined_call_operand.vmem [shape: bf16[1152,128], index: 1, kind: input, shape index: {}]   ;;  %s1874_s2 = inlined_call_operand.vmem [shape: f32[1,128], index: 2, kind: input, shape index: {}]   ;;  %s1875_s3 = inlined_call_operand.vmem [shape: f32[1,128], index: 3, kind: input, shape index: {}]   ;;  %s1876_s4 = inlined_call_operand.vmem [shape: bf16[128,128], index: 4, kind: output, shape index: {}]  }
   0x1   :  { %s1565_s17 = smov 0   ;;  %s1567_s18 = smov 0  }
   0x2   :  { %s1569_s19 = smov 0  }
   0x3 LB: > { %s23_s20 = sadd.s32 1, %s1529_s18  ;;  %p42_p1 = scmp.ne.s32.totalorder %s1521_s16, %s1517_s15  ;;  %s1533_s19 = sphi %s1569_s19, %s14_s19   ;;  %s1529_s18 = sphi %s1567_s18, %s1880_s18   ;;  %s1525_s17 = sphi %s1565_s17, %s1879_s17   ;;  %s1521_s16 = sphi %s1563_s16, %s1878_s16   ;;  %s1517_s15 = sphi %s1561_s15, %s1877_s15  }
   0x4   : > { %p24_p0 = scmp.ge.s32.totalorder %s23_s20, 3  ;;  %p43_p2 = scmp.eq.s32.totalorder %s1533_s19, 0 }
   0x5   : > { %s35_s22 = sadd.s32 1, %s1521_s16  ;;  %p1096_p5 = scmp.ge.s32.totalorder %s1533_s19, 3 }
   0x6   : > { %s1882_s20 = smov (%p24_p0, %s23_s20), 0  ;;  %p44_p3 = por %p43_p2, %p42_p1 }
   0x7   : > { %s31_s21 = ssub.s32 %s1529_s18, %s1882_s20  ;;  %168 = sbr.rel (%p1096_p5) target bundleno = 49 (0x31), region = 24 }
   0x8   : > { %p33_p4 = scmp.eq.s32.totalorder %s31_s21, 0 }
   0xa   : > { %s1596_s23 = scalar_select %p33_p4, %s1521_s16, %s35_s22  }
   0xc   : > { %171 = sbr.rel (!%p44_p3) target bundleno = 49 (0x31), region = 28  ;;  %s173_s24 = sand.u32 (%p44_p3), 1, %s1521_s16  }
   0xd   : > { %s1330_s25 = smul.u32 (%p44_p3), 12, %s1529_s18 }
   0xe   : > { %s1450_s26 = smul.u32 (%p44_p3), 192, %s173_s24 }
   0xf   : > { %s1604_s29 = scalar_lea.vmem (%p44_p3), %s1872_s0, %s1330_s25 }
  0x10   : > { %v196_v0 = vld [vmem:[%s1604_s29] sm:$0xff] (%p44_p3)  ;;  %v200_v2 = vld [vmem:[%s1604_s29 + $0x48] sm:$0xff] (%p44_p3)  ;;  %s1609_s30 = scalar_lea.vmem (%p44_p3), [#allocation3], %s1450_s26  ;;  %v204_v4 = vld [vmem:[%s1604_s29 + $0x90] sm:$0xff] (%p44_p3) }
  0x11   : > { %v198_v1 = vld [vmem:[%s1604_s29 + $0x24] sm:$0xff]  ;;  %197 = vst [vmem:[%s1609_s30] sm:$0xff] %v196_v0  ;;  %v202_v3 = vld [vmem:[%s1604_s29 + $0x6c] sm:$0xff]  ;;  %v206_v5 = vld [vmem:[%s1604_s29 + $0xb4] sm:$0xff] }
  0x12   : > { %199 = vst [vmem:[%s1609_s30 + $0xc] sm:$0xff] %v198_v1  ;;  %v208_v6 = vld [vmem:[%s1604_s29 + $0xd8] sm:$0xff]  ;;  %v212_v8 = vld [vmem:[%s1604_s29 + $0x120] sm:$0xff]  ;;  %v216_v10 = vld [vmem:[%s1604_s29 + $0x168] sm:$0xff] }
  0x13   : > { %201 = vst [vmem:[%s1609_s30 + $0x18] sm:$0xff] %v200_v2  ;;  %v210_v7 = vld [vmem:[%s1604_s29 + $0xfc] sm:$0xff]  ;;  %v214_v9 = vld [vmem:[%s1604_s29 + $0x144] sm:$0xff]  ;;  %v218_v11 = vld [vmem:[%s1604_s29 + $0x18c] sm:$0xff] }
  0x14   : > { %203 = vst [vmem:[%s1609_s30 + $0x24] sm:$0xff] %v202_v3  ;;  %v220_v12 = vld [vmem:[%s1604_s29 + $0x1b0] sm:$0xff]  ;;  %v224_v14 = vld [vmem:[%s1604_s29 + $0x1f8] sm:$0xff]  ;;  %v1098_v16 = vld [vmem:[%s1604_s29 + $0x8] sm:$0xf] }
  0x15   : > { %205 = vst [vmem:[%s1609_s30 + $0x30] sm:$0xff] %v204_v4  ;;  %v222_v13 = vld [vmem:[%s1604_s29 + $0x1d4] sm:$0xff]  ;;  %v226_v15 = vld [vmem:[%s1604_s29 + $0x21c] sm:$0xff]  ;;  %v1100_v17 = vld [vmem:[%s1604_s29 + $0x2c] sm:$0xf] }
  0x16   : > { %207 = vst [vmem:[%s1609_s30 + $0x3c] sm:$0xff] %v206_v5  ;;  %v1102_v18 = vld [vmem:[%s1604_s29 + $0x50] sm:$0xf]  ;;  %v1104_v19 = vld [vmem:[%s1604_s29 + $0x74] sm:$0xf] }
  0x17   : > { %209 = vst [vmem:[%s1609_s30 + $0x48] sm:$0xff] %v208_v6  ;;  %v1106_v20 = vld [vmem:[%s1604_s29 + $0x98] sm:$0xf]  ;;  %v1108_v21 = vld [vmem:[%s1604_s29 + $0xbc] sm:$0xf] }
  0x18   : > { %211 = vst [vmem:[%s1609_s30 + $0x54] sm:$0xff] %v210_v7  ;;  %v1110_v22 = vld [vmem:[%s1604_s29 + $0xe0] sm:$0xf]  ;;  %v1112_v23 = vld [vmem:[%s1604_s29 + $0x104] sm:$0xf] }
  0x19   : > { %213 = vst [vmem:[%s1609_s30 + $0x60] sm:$0xff] %v212_v8  ;;  %v1114_v24 = vld [vmem:[%s1604_s29 + $0x128] sm:$0xf]  ;;  %v1116_v25 = vld [vmem:[%s1604_s29 + $0x14c] sm:$0xf] }
  0x1a   : > { %215 = vst [vmem:[%s1609_s30 + $0x6c] sm:$0xff] %v214_v9  ;;  %v1118_v26 = vld [vmem:[%s1604_s29 + $0x170] sm:$0xf]  ;;  %v1120_v27 = vld [vmem:[%s1604_s29 + $0x194] sm:$0xf] }
  0x1b   : > { %217 = vst [vmem:[%s1609_s30 + $0x78] sm:$0xff] %v216_v10  ;;  %v1122_v28 = vld [vmem:[%s1604_s29 + $0x1b8] sm:$0xf]  ;;  %v1124_v29 = vld [vmem:[%s1604_s29 + $0x1dc] sm:$0xf] }
  0x1c   : > { %219 = vst [vmem:[%s1609_s30 + $0x84] sm:$0xff] %v218_v11  ;;  %v1126_v30 = vld [vmem:[%s1604_s29 + $0x200] sm:$0xf]  ;;  %v1128_v31 = vld [vmem:[%s1604_s29 + $0x224] sm:$0xf] }
  0x1d   : > { %221 = vst [vmem:[%s1609_s30 + $0x90] sm:$0xff] %v220_v12 }
  0x1e   : > { %223 = vst [vmem:[%s1609_s30 + $0x9c] sm:$0xff] %v222_v13 }
  0x1f   : > { %225 = vst [vmem:[%s1609_s30 + $0xa8] sm:$0xff] %v224_v14 }
  0x20   : > { %227 = vst [vmem:[%s1609_s30 + $0xb4] sm:$0xff] %v226_v15 }
  0x21   : > { %1099 = vst [vmem:[%s1609_s30 + $0x8] sm:$0xf] %v1098_v16 }
  0x22   : > { %1101 = vst [vmem:[%s1609_s30 + $0x14] sm:$0xf] %v1100_v17 }
  0x23   : > { %1103 = vst [vmem:[%s1609_s30 + $0x20] sm:$0xf] %v1102_v18 }
  0x24   : > { %1105 = vst [vmem:[%s1609_s30 + $0x2c] sm:$0xf] %v1104_v19 }
  0x25   : > { %1107 = vst [vmem:[%s1609_s30 + $0x38] sm:$0xf] %v1106_v20 }
  0x26   : > { %1109 = vst [vmem:[%s1609_s30 + $0x44] sm:$0xf] %v1108_v21 }
  0x27   : > { %1111 = vst [vmem:[%s1609_s30 + $0x50] sm:$0xf] %v1110_v22 }
  0x28   : > { %1113 = vst [vmem:[%s1609_s30 + $0x5c] sm:$0xf] %v1112_v23 }
  0x29   : > { %1115 = vst [vmem:[%s1609_s30 + $0x68] sm:$0xf] %v1114_v24 }
  0x2a   : > { %1117 = vst [vmem:[%s1609_s30 + $0x74] sm:$0xf] %v1116_v25 }
  0x2b   : > { %1119 = vst [vmem:[%s1609_s30 + $0x80] sm:$0xf] %v1118_v26 }
  0x2c   : > { %1121 = vst [vmem:[%s1609_s30 + $0x8c] sm:$0xf] %v1120_v27 }
  0x2d   : > { %1123 = vst [vmem:[%s1609_s30 + $0x98] sm:$0xf] %v1122_v28 }
  0x2e   : > { %1125 = vst [vmem:[%s1609_s30 + $0xa4] sm:$0xf] %v1124_v29 }
  0x2f   : > { %1127 = vst [vmem:[%s1609_s30 + $0xb0] sm:$0xf] %v1126_v30 }
  0x30   : > { %1129 = vst [vmem:[%s1609_s30 + $0xbc] sm:$0xf] %v1128_v31 }
  0x31 PF: > { %p1130_p6 = scmp.ge.s32.totalorder %s1533_s19, 1  ;;  %p281_p7 = scmp.lt.s32.totalorder %s1533_s19, 4 }
  0x33   : > { %p282_p8 = pnand %p1130_p6, %p281_p7 }
  0x34   : > { %s288_s5 = sand.u32 (!%p282_p8), 1, %s1517_s15   ;;  %s320_s6 = smul.u32 (!%p282_p8), 48, %s1525_s17 }
  0x35   : > { %285 = sbr.rel (%p282_p8) target bundleno = 360 (0x168), region = 58  ;;  %p1132_p10 = scmp.ne.s32.totalorder (!%p282_p8), %s1525_s17, 0 }
  0x36   : > { %s1451_s7 = smul.u32 (!%p282_p8), 192, %s288_s5  ;;  %p321_p9 = scmp.lt.s32.totalorder (!%p282_p8), %s320_s6, 143 }
  0x38   : > { %s1681_s12 = scalar_lea.vmem (!%p282_p8), [#allocation3], %s1451_s7 }
  0x3a   : > { %s1884_s6 = smov (!%p321_p9, %s320_s6), 143  ;;  %335 = sbr.rel (%p1132_p10) target bundleno = 80 (0x50), region = 66 }
  0x3b   : > { %s1131_s8 = sshll.u32 %s1884_s6, 2 }
  0x3c   : > { %s1679_s11 = scalar_lea.vmem %s1873_s1, %s1131_s8 }
  0x3f   : > { %v1535_v32 = vmov 0.0  }
  0x40   : > { %336 = vst [vmem:[#allocation2 + $0x30] sm:$0xff] %v1535_v32 }
  0x41   : > { %337 = vst [vmem:[#allocation2] sm:$0xff] %v1535_v32 }
  0x42   : > { %338 = vst [vmem:[#allocation2 + $0x58] sm:$0xff] %v1535_v32 }
  0x43   : > { %339 = vst [vmem:[#allocation2 + $0x18] sm:$0xff] %v1535_v32 }
  0x44   : > { %340 = vst [vmem:[#allocation2 + $0x50] sm:$0xff] %v1535_v32 }
  0x45   : > { %341 = vst [vmem:[#allocation2 + $0x68] sm:$0xff] %v1535_v32 }
  0x46   : > { %342 = vst [vmem:[#allocation2 + $0x8] sm:$0xff] %v1535_v32 }
  0x47   : > { %343 = vst [vmem:[#allocation2 + $0x48] sm:$0xff] %v1535_v32 }
  0x48   : > { %344 = vst [vmem:[#allocation2 + $0x40] sm:$0xff] %v1535_v32 }
  0x49   : > { %345 = vst [vmem:[#allocation2 + $0x20] sm:$0xff] %v1535_v32 }
  0x4a   : > { %346 = vst [vmem:[#allocation2 + $0x10] sm:$0xff] %v1535_v32 }
  0x4b   : > { %347 = vst [vmem:[#allocation2 + $0x38] sm:$0xff] %v1535_v32 }
  0x4c   : > { %348 = vst [vmem:[#allocation2 + $0x60] sm:$0xff] %v1535_v32 }
  0x4d   : > { %349 = vst [vmem:[#allocation2 + $0x70] sm:$0xff] %v1535_v32 }
  0x4e   : > { %350 = vst [vmem:[#allocation2 + $0x78] sm:$0xff] %v1535_v32 }
  0x4f   : > { %351 = vst [vmem:[#allocation2 + $0x28] sm:$0xff] %v1535_v32 }
  0x50 PF: > { %v1362_v33 = vld [vmem:[%s1679_s11 + $0x38] sm:$0xff]  ;;  %v1361_v36 = vld [vmem:[%s1679_s11 + $0x30] sm:$0xff]  ;;  %v1360_v39 = vld [vmem:[%s1679_s11 + $0x28] sm:$0xff]  ;;  %p1325_p11 = scmp.ne.s32.totalorder %s1525_s17, 2 }
  0x51   : > { %v1686_v34 = vld [vmem:[%s1679_s11 + $0x78] sm:$0xff]  ;;  %720 = vmatpush.bf16.msra.mxu0 %v1362_v33  ;;  %1426 = vmatpush.bf16.msra.mxu3 %v1362_v33  ;;  %v1695_v37 = vld [vmem:[%s1679_s11 + $0x70] sm:$0xff]  ;;  %v1368_v40 = vld [vmem:[%s1679_s11 + $0x68] sm:$0xff] }
  0x52   : > { %v1689_v35 = vld [vmem:[%s1679_s11 + $0xb8] sm:$0xff]  ;;  %769 = vmatpush.bf16.msra.mxu1 %v1686_v34  ;;  %v1698_v38 = vld [vmem:[%s1679_s11 + $0xb0] sm:$0xff]  ;;  %v1705_v41 = vld [vmem:[%s1679_s11 + $0xa8] sm:$0xff] }
  0x53   : > { %818 = vmatpush.bf16.msra.mxu2 %v1689_v35  ;;  %v1359_v42 = vld [vmem:[%s1679_s11 + $0x20] sm:$0xff]  ;;  %v1358_v45 = vld [vmem:[%s1679_s11 + $0x18] sm:$0xff]  ;;  %v1357_v48 = vld [vmem:[%s1679_s11 + $0x10] sm:$0xff] }
  0x54   : > { %v1367_v43 = vld [vmem:[%s1679_s11 + $0x60] sm:$0xff]  ;;  %v1366_v46 = vld [vmem:[%s1679_s11 + $0x58] sm:$0xff]  ;;  %v1365_v49 = vld [vmem:[%s1679_s11 + $0x50] sm:$0xff] }
  0x55   : > { %721 = vmatpush.bf16.msra.mxu0 %v1361_v36  ;;  %1427 = vmatpush.bf16.msra.mxu3 %v1361_v36  ;;  %v1711_v44 = vld [vmem:[%s1679_s11 + $0xa0] sm:$0xff]  ;;  %v1717_v47 = vld [vmem:[%s1679_s11 + $0x98] sm:$0xff]  ;;  %v1723_v50 = vld [vmem:[%s1679_s11 + $0x90] sm:$0xff] }
  0x56   : > { %770 = vmatpush.bf16.msra.mxu1 %v1695_v37  ;;  %v1356_v51 = vld [vmem:[%s1679_s11 + $0x8] sm:$0xff]  ;;  %v1355_v54 = vld [vmem:[%s1679_s11] sm:$0xff]  ;;  %v1207_v59 = vld [vmem:[%s1681_s12 + $0x90] sm:$0xf] }
  0x57   : > { %819 = vmatpush.bf16.msra.mxu2 %v1698_v38  ;;  %v1364_v52 = vld [vmem:[%s1679_s11 + $0x48] sm:$0xff]  ;;  %v1363_v55 = vld [vmem:[%s1679_s11 + $0x40] sm:$0xff]  ;;  %v1350_v60 = vld [vmem:[%s1681_s12 + $0x98] sm:$0xf0] }
  0x58   : > { %v1729_v53 = vld [vmem:[%s1679_s11 + $0x88] sm:$0xff]  ;;  %v1734_v56 = vld [vmem:[%s1679_s11 + $0x80] sm:$0xff]  ;;  %v1137_v62 = vld [vmem:[%s1681_s12 + $0xc] sm:$0xf0]  ;;  %v1208_v2 = vor.u32 %v1350_v60, %v1207_v59 }
  0x59   : > { %722 = vmatpush.bf16.msra.mxu0 %v1360_v39  ;;  %1428 = vmatpush.bf16.msra.mxu3 %v1360_v39  ;;  %v1135_v57 = vld [vmem:[%s1681_s12] sm:$0xf]  ;;  %v1332_v58 = vld [vmem:[%s1681_s12 + $0x8] sm:$0xf0]  ;;  %v1331_v61 = vld [vmem:[%s1681_s12 + $0x4] sm:$0xf] }
  0x5a   : > { %771 = vmatpush.bf16.msra.mxu1 %v1368_v40  ;;  %v1143_v63 = vld [vmem:[%s1681_s12 + $0x8] sm:$0xf]  ;;  %v1333_v0 = vld [vmem:[%s1681_s12 + $0x10] sm:$0xf0]  ;;  %v1136_v1 = vor.u32 %v1332_v58, %v1135_v57  ;;  %v1140_v3 = vor.u32 %v1331_v61, %v1137_v62  ;;  %v1147_v5 = vld [vmem:[%s1681_s12 + $0x18] sm:$0xf] }
  0x5b   : > { %820 = vmatpush.bf16.msra.mxu2 %v1705_v41  ;;  %v1144_v4 = vor.u32 %v1333_v0, %v1143_v63  ;;  %v1335_v6 = vld [vmem:[%s1681_s12 + $0x20] sm:$0xf0]  ;;  %v1219_v7 = vld [vmem:[%s1681_s12 + $0xa8] sm:$0xf]  ;;  %v1353_v8 = vld [vmem:[%s1681_s12 + $0xb0] sm:$0xf0] }
  0x5c   : > { %v1334_v9 = vld [vmem:[%s1681_s12 + $0x1c] sm:$0xf]  ;;  %v1149_v10 = vld [vmem:[%s1681_s12 + $0x24] sm:$0xf0]  ;;  %v1155_v11 = vld [vmem:[%s1681_s12 + $0x20] sm:$0xf]  ;;  %v1148_v13 = vor.u32 %v1335_v6, %v1147_v5  ;;  %v1220_v14 = vor.u32 %v1353_v8, %v1219_v7 }
  0x5d   : > { %723 = vmatpush.bf16.msra.mxu0 %v1359_v42  ;;  %1429 = vmatpush.bf16.msra.mxu3 %v1359_v42  ;;  %v1336_v12 = vld [vmem:[%s1681_s12 + $0x28] sm:$0xf0]  ;;  %v1152_v15 = vor.u32 %v1334_v9, %v1149_v10  ;;  %v1159_v17 = vld [vmem:[%s1681_s12 + $0x30] sm:$0xf]  ;;  %v1338_v18 = vld [vmem:[%s1681_s12 + $0x38] sm:$0xf0] }
  0x5e   : > { %772 = vmatpush.bf16.msra.mxu1 %v1367_v43  ;;  %v1156_v16 = vor.u32 %v1336_v12, %v1155_v11  ;;  %v1337_v19 = vld [vmem:[%s1681_s12 + $0x34] sm:$0xf]  ;;  %v1209_v21 = vld [vmem:[%s1681_s12 + $0x9c] sm:$0xf0]  ;;  %v1167_v23 = vld [vmem:[%s1681_s12 + $0x38] sm:$0xf]  ;;  %v1160_v25 = vor.u32 %v1338_v18, %v1159_v17 }
  0x5f   : > { %821 = vmatpush.bf16.msra.mxu2 %v1711_v44  ;;  %v1349_v20 = vld [vmem:[%s1681_s12 + $0x94] sm:$0xf]  ;;  %v1161_v22 = vld [vmem:[%s1681_s12 + $0x3c] sm:$0xf0]  ;;  %v1339_v24 = vld [vmem:[%s1681_s12 + $0x40] sm:$0xf0] }
  0x60   : > { %v1212_v26 = vor.u32 %v1349_v20, %v1209_v21  ;;  %v1164_v27 = vor.u32 %v1337_v19, %v1161_v22  ;;  %v1168_v28 = vor.u32 %v1339_v24, %v1167_v23  ;;  %v1171_v29 = vld [vmem:[%s1681_s12 + $0x48] sm:$0xf]  ;;  %v1341_v30 = vld [vmem:[%s1681_s12 + $0x50] sm:$0xf0]  ;;  %v1340_v31 = vld [vmem:[%s1681_s12 + $0x4c] sm:$0xf] }
  0x61   : > { %724 = vmatpush.bf16.msra.mxu0 %v1358_v45  ;;  %1430 = vmatpush.bf16.msra.mxu3 %v1358_v45  ;;  %v1352_v32 = vld [vmem:[%s1681_s12 + $0xac] sm:$0xf]  ;;  %v1221_v33 = vld [vmem:[%s1681_s12 + $0xb4] sm:$0xf0]  ;;  %v1342_v36 = vld [vmem:[%s1681_s12 + $0x58] sm:$0xf0] }
  0x62   : > { %773 = vmatpush.bf16.msra.mxu1 %v1366_v46  ;;  %v1224_v39 = vor.u32 %v1352_v32, %v1221_v33  ;;  %v1344_v42 = vld [vmem:[%s1681_s12 + $0x68] sm:$0xf0]  ;;  %v1351_v45 = vld [vmem:[%s1681_s12 + $0xa0] sm:$0xf0]  ;;  %v1227_v57 = vld [vmem:[%s1681_s12 + $0xb0] sm:$0xf] }
  0x63   : > { %822 = vmatpush.bf16.msra.mxu2 %v1717_v47  ;;  %v1197_v58 = vld [vmem:[%s1681_s12 + $0x84] sm:$0xf0]  ;;  %v1203_v59 = vld [vmem:[%s1681_s12 + $0x80] sm:$0xf]  ;;  %v1348_v60 = vld [vmem:[%s1681_s12 + $0x88] sm:$0xf0] }
  0x64   : > { %v1204_v0 = vor.u32 %v1348_v60, %v1203_v59  ;;  %v352_v5 = vld [vmem:[#allocation2 + $0x30] sm:$0xff]  ;;  %v354_v21 = vld [vmem:[#allocation2 + $0x58] sm:$0xff] }
  0x65   : > { %725 = vmatpush.bf16.msra.mxu0 %v1357_v48  ;;  %1431 = vmatpush.bf16.msra.mxu3 %v1357_v48  ;;  %v1345_v48 = vld [vmem:[%s1681_s12 + $0x70] sm:$0xf0] }
  0x66   : > { %774 = vmatpush.bf16.msra.mxu1 %v1365_v49 }
  0x67   : > { %823 = vmatpush.bf16.msra.mxu2 %v1723_v50 }
  0x69   : > { %726 = vmatpush.bf16.msra.mxu0 %v1356_v51  ;;  %1432 = vmatpush.bf16.msra.mxu3 %v1356_v51 }
  0x6a   : > { %775 = vmatpush.bf16.msra.mxu1 %v1364_v52 }
  0x6b   : > { %824 = vmatpush.bf16.msra.mxu2 %v1729_v53 }
  0x6d   : > { %727 = vmatpush.bf16.msra.mxu0 %v1355_v54  ;;  %1433 = vmatpush.bf16.msra.mxu3 %v1355_v54  ;;  %v1347_v54 = vld [vmem:[%s1681_s12 + $0x80] sm:$0xf0] }
  0x6e   : > { %776 = vmatpush.bf16.msra.mxu1 %v1363_v55 }
  0x6f   : > { %825 = vmatpush.bf16.msra.mxu2 %v1734_v56 }
  0x70   : > { %728 = vmatmul.bf16.vlgmr.msra.gmra.mxu0 %v1136_v1  ;;  %758 = vmatmul.bf16.vlgmr.msra.gmra.mxu3 %v1208_v2 }
  0x71   : > { %1434 = vmatpush.bf16.msrb.mxu3 %v1686_v34  ;;  %777 = vmatmul.bf16.vlgmr.msra.gmra.mxu1 %v1140_v3  ;;  %v1173_v34 = vld [vmem:[%s1681_s12 + $0x54] sm:$0xf0] }
  0x72   : > { %826 = vmatmul.bf16.vlgmr.msra.gmra.mxu2 %v1144_v4 }
  0x75   : > { %1435 = vmatpush.bf16.msrb.mxu3 %v1695_v37  ;;  %v1172_v37 = vor.u32 %v1341_v30, %v1171_v29  ;;  %v355_v29 = vld [vmem:[#allocation2 + $0x18] sm:$0xff] }
  0x79   : > { %1436 = vmatpush.bf16.msrb.mxu3 %v1368_v40 }
  0x7d   : > { %1437 = vmatpush.bf16.msrb.mxu3 %v1367_v43  ;;  %v1343_v43 = vld [vmem:[%s1681_s12 + $0x64] sm:$0xf] }
  0x80   : > { %733 = vmatmul.bf16.gmra.mxu0 %v1148_v13  ;;  %763 = vmatmul.bf16.gmra.mxu3 %v1220_v14  ;;  %v353_v13 = vld [vmem:[#allocation2] sm:$0xff] }
  0x81   : > { %1438 = vmatpush.bf16.msrb.mxu3 %v1366_v46  ;;  %782 = vmatmul.bf16.gmra.mxu1 %v1152_v15  ;;  %v1185_v46 = vld [vmem:[%s1681_s12 + $0x6c] sm:$0xf0] }
  0x82   : > { %831 = vmatmul.bf16.gmra.mxu2 %v1156_v16  ;;  %v1188_v51 = vor.u32 %v1343_v43, %v1185_v46 }
  0x85   : > { %1439 = vmatpush.bf16.msrb.mxu3 %v1365_v49 }
  0x89   : > { %1440 = vmatpush.bf16.msrb.mxu3 %v1364_v52 }
  0x8d   : > { %1441 = vmatpush.bf16.msrb.mxu3 %v1363_v55  ;;  %v1346_v55 = vld [vmem:[%s1681_s12 + $0x7c] sm:$0xf] }
  0x8e   : > { %v1200_v63 = vor.u32 %v1346_v55, %v1197_v58 }
  0x90   : > { %738 = vmatmul.bf16.gmra.mxu0 %v1160_v25  ;;  %807 = vmatmul.bf16.vlgmr.msrb.gmra.mxu3 %v1212_v26 }
  0x91   : > { %1442 = vmatpush.bf16.msra.mxu3 %v1689_v35  ;;  %787 = vmatmul.bf16.gmra.mxu1 %v1164_v27  ;;  %v1179_v35 = vld [vmem:[%s1681_s12 + $0x50] sm:$0xf] }
  0x92   : > { %836 = vmatmul.bf16.gmra.mxu2 %v1168_v28  ;;  %v1180_v40 = vor.u32 %v1342_v36, %v1179_v35 }
  0x95   : > { %1443 = vmatpush.bf16.msra.mxu3 %v1698_v38  ;;  %v1176_v38 = vor.u32 %v1340_v31, %v1173_v34 }
  0x99   : > { %1444 = vmatpush.bf16.msra.mxu3 %v1705_v41  ;;  %v1183_v41 = vld [vmem:[%s1681_s12 + $0x60] sm:$0xf] }
  0x9a   : > { %v1184_v49 = vor.u32 %v1344_v42, %v1183_v41 }
  0x9d   : > { %1445 = vmatpush.bf16.msra.mxu3 %v1711_v44  ;;  %v1215_v44 = vld [vmem:[%s1681_s12 + $0x98] sm:$0xf] }
  0xa0   : > { %743 = vmatmul.bf16.gmra.mxu0 %v1172_v37  ;;  %812 = vmatmul.bf16.gmra.mxu3 %v1224_v39  ;;  %v356_v37 = vld [vmem:[#allocation2 + $0x50] sm:$0xff] }
  0xa1   : > { %1446 = vmatpush.bf16.msra.mxu3 %v1717_v47  ;;  %792 = vmatmul.bf16.gmra.mxu1 %v1176_v38  ;;  %v1191_v47 = vld [vmem:[%s1681_s12 + $0x68] sm:$0xf] }
  0xa2   : > { %841 = vmatmul.bf16.gmra.mxu2 %v1180_v40  ;;  %v1192_v52 = vor.u32 %v1345_v48, %v1191_v47 }
  0xa5   : > { %1447 = vmatpush.bf16.msra.mxu3 %v1723_v50  ;;  %v1216_v50 = vor.u32 %v1351_v45, %v1215_v44  ;;  %v357_v45 = vld [vmem:[#allocation2 + $0x68] sm:$0xff] }
  0xa9   : > { %1448 = vmatpush.bf16.msra.mxu3 %v1729_v53  ;;  %v1195_v53 = vld [vmem:[%s1681_s12 + $0x78] sm:$0xf] }
  0xaa   : > { %v1196_v61 = vor.u32 %v1347_v54, %v1195_v53  ;;  %v358_v53 = vld [vmem:[#allocation2 + $0x8] sm:$0xff] }
  0xad   : > { %1449 = vmatpush.bf16.msra.mxu3 %v1734_v56  ;;  %v1354_v56 = vld [vmem:[%s1681_s12 + $0xb8] sm:$0xf0] }
  0xae   : > { %v1228_v62 = vor.u32 %v1354_v56, %v1227_v57 }
  0xb0   : > { %748 = vmatmul.bf16.gmra.mxu0 %v1184_v49  ;;  %856 = vmatmul.bf16.vlgmr.msra.gmra.mxu3 %v1216_v50 }
  0xb1   : > { %797 = vmatmul.bf16.gmra.mxu1 %v1188_v51 }
  0xb2   : > { %846 = vmatmul.bf16.gmra.mxu2 %v1192_v52 }
  0xc0   : > { %753 = vmatmul.bf16.gmra.mxu0 %v1196_v61  ;;  %861 = vmatmul.bf16.gmra.mxu3 %v1228_v62  ;;  %v359_v61 = vld [vmem:[#allocation2 + $0x48] sm:$0xff] }
  0xc1   : > { %802 = vmatmul.bf16.gmra.mxu1 %v1200_v63 }
  0xc2   : > { %851 = vmatmul.bf16.gmra.mxu2 %v1204_v0 }
  0xed   : > { %v729_v1 = vpop.f32.mrf.mxu0 }
  0xee   : > { %v778_v2 = vpop.f32.mrf.mxu1 }
  0xef   : > { %v779_v3 = vadd.f32 %v778_v2, %v729_v1 }
  0xf3   : > { %v1796_v4 = vpop.f32.mrf.mxu3 }
  0xf5   : > { %v827_v6 = vpop.f32.mrf.mxu2  ;;  %v731_v8 = vpop.f32.mrf.mxu0 }
  0xf6   : > { %v828_v7 = vadd.f32 %v827_v6, %v779_v3  ;;  %v780_v9 = vpop.f32.mrf.mxu1  ;;  %v364_v6 = vld [vmem:[#allocation2 + $0x60] sm:$0xff] }
  0xf7   : > { %v781_v11 = vadd.f32 %v780_v9, %v731_v8  ;;  %v360_v8 = vld [vmem:[#allocation2 + $0x40] sm:$0xff] }
  0xf8   : > { %v867_v10 = vadd.f32 %v828_v7, %v352_v5 }
  0xfa   : > { %883 = vst [vmem:[#allocation2 + $0x30] sm:$0xff] %v867_v10 }
  0xfb   : > { %v1798_v12 = vpop.f32.mrf.mxu3 }
  0xfd   : > { %v829_v14 = vpop.f32.mrf.mxu2  ;;  %v734_v16 = vpop.f32.mrf.mxu0 }
  0xfe   : > { %v830_v15 = vadd.f32 %v829_v14, %v781_v11  ;;  %v783_v17 = vpop.f32.mrf.mxu1 }
  0xff   : > { %v784_v19 = vadd.f32 %v783_v17, %v734_v16 }
 0x100   : > { %v868_v18 = vadd.f32 %v830_v15, %v353_v13 }
 0x102   : > { %884 = vst [vmem:[#allocation2] sm:$0xff] %v868_v18 }
 0x103   : > { %v1800_v20 = vpop.f32.mrf.mxu3 }
 0x105   : > { %v832_v22 = vpop.f32.mrf.mxu2  ;;  %v736_v24 = vpop.f32.mrf.mxu0 }
 0x106   : > { %v833_v23 = vadd.f32 %v832_v22, %v784_v19  ;;  %v785_v25 = vpop.f32.mrf.mxu1  ;;  %v365_v19 = vld [vmem:[#allocation2 + $0x70] sm:$0xff]  ;;  %v361_v22 = vld [vmem:[#allocation2 + $0x20] sm:$0xff] }
 0x107   : > { %v786_v27 = vadd.f32 %v785_v25, %v736_v24 }
 0x108   : > { %v869_v26 = vadd.f32 %v833_v23, %v354_v21 }
 0x10a   : > { %885 = vst [vmem:[#allocation2 + $0x58] sm:$0xff] %v869_v26 }
 0x10b   : > { %v1802_v28 = vpop.f32.mrf.mxu3 }
 0x10d   : > { %v834_v30 = vpop.f32.mrf.mxu2  ;;  %v739_v32 = vpop.f32.mrf.mxu0 }
 0x10e   : > { %v835_v31 = vadd.f32 %v834_v30, %v786_v27  ;;  %v788_v33 = vpop.f32.mrf.mxu1 }
 0x10f   : > { %v789_v35 = vadd.f32 %v788_v33, %v739_v32  ;;  %v366_v32 = vld [vmem:[#allocation2 + $0x78] sm:$0xff] }
 0x110   : > { %v870_v34 = vadd.f32 %v835_v31, %v355_v29 }
 0x112   : > { %886 = vst [vmem:[#allocation2 + $0x18] sm:$0xff] %v870_v34  ;;  %v362_v34 = vld [vmem:[#allocation2 + $0x10] sm:$0xff] }
 0x113   : > { %v808_v36 = vpop.f32.mrf.mxu3 }
 0x114   : > { %v809_v5 = vadd.f32 %v808_v36, %v1796_v4 }
 0x115   : > { %v837_v39 = vpop.f32.mrf.mxu2  ;;  %v741_v40 = vpop.f32.mrf.mxu0 }
 0x116   : > { %v838_v38 = vadd.f32 %v837_v39, %v789_v35  ;;  %v790_v41 = vpop.f32.mrf.mxu1 }
 0x117   : > { %v791_v43 = vadd.f32 %v790_v41, %v741_v40 }
 0x118   : > { %v871_v42 = vadd.f32 %v838_v38, %v356_v37 }
 0x11a   : > { %887 = vst [vmem:[#allocation2 + $0x50] sm:$0xff] %v871_v42 }
 0x11b   : > { %v810_v44 = vpop.f32.mrf.mxu3 }
 0x11c   : > { %v811_v17 = vadd.f32 %v810_v44, %v1798_v12 }
 0x11d   : > { %v839_v46 = vpop.f32.mrf.mxu2  ;;  %v744_v48 = vpop.f32.mrf.mxu0 }
 0x11e   : > { %v840_v47 = vadd.f32 %v839_v46, %v791_v43  ;;  %v793_v49 = vpop.f32.mrf.mxu1  ;;  %v367_v43 = vld [vmem:[#allocation2 + $0x28] sm:$0xff] }
 0x11f   : > { %v794_v51 = vadd.f32 %v793_v49, %v744_v48 }
 0x120   : > { %v872_v50 = vadd.f32 %v840_v47, %v357_v45  ;;  %v363_v45 = vld [vmem:[#allocation2 + $0x38] sm:$0xff] }
 0x122   : > { %888 = vst [vmem:[#allocation2 + $0x68] sm:$0xff] %v872_v50 }
 0x123   : > { %v813_v52 = vpop.f32.mrf.mxu3 }
 0x124   : > { %v814_v31 = vadd.f32 %v813_v52, %v1800_v20 }
 0x125   : > { %v842_v54 = vpop.f32.mrf.mxu2  ;;  %v746_v57 = vpop.f32.mrf.mxu0 }
 0x126   : > { %v843_v55 = vadd.f32 %v842_v54, %v794_v51  ;;  %v795_v56 = vpop.f32.mrf.mxu1 }
 0x127   : > { %v796_v59 = vadd.f32 %v795_v56, %v746_v57 }
 0x128   : > { %v873_v58 = vadd.f32 %v843_v55, %v358_v53 }
 0x12a   : > { %889 = vst [vmem:[#allocation2 + $0x8] sm:$0xff] %v873_v58 }
 0x12b   : > { %v815_v60 = vpop.f32.mrf.mxu3 }
 0x12c   : > { %v816_v41 = vadd.f32 %v815_v60, %v1802_v28 }
 0x12d   : > { %v844_v62 = vpop.f32.mrf.mxu2  ;;  %v749_v0 = vpop.f32.mrf.mxu0 }
 0x12e   : > { %v845_v63 = vadd.f32 %v844_v62, %v796_v59  ;;  %v798_v1 = vpop.f32.mrf.mxu1 }
 0x12f   : > { %v799_v3 = vadd.f32 %v798_v1, %v749_v0 }
 0x130   : > { %v874_v2 = vadd.f32 %v845_v63, %v359_v61 }
 0x132   : > { %890 = vst [vmem:[#allocation2 + $0x48] sm:$0xff] %v874_v2 }
 0x133   : > { %v857_v7 = vpop.f32.mrf.mxu3 }
 0x134   : > { %v858_v10 = vadd.f32 %v857_v7, %v809_v5 }
 0x135   : > { %v847_v9 = vpop.f32.mrf.mxu2  ;;  %v751_v13 = vpop.f32.mrf.mxu0 }
 0x136   : > { %v848_v11 = vadd.f32 %v847_v9, %v799_v3  ;;  %v879_v14 = vadd.f32 %v858_v10, %v364_v6  ;;  %v800_v15 = vpop.f32.mrf.mxu1 }
 0x137   : > { %v801_v18 = vadd.f32 %v800_v15, %v751_v13 }
 0x138   : > { %v875_v16 = vadd.f32 %v848_v11, %v360_v8  ;;  %895 = vst [vmem:[#allocation2 + $0x60] sm:$0xff] %v879_v14 }
 0x13a   : > { %891 = vst [vmem:[#allocation2 + $0x40] sm:$0xff] %v875_v16 }
 0x13b   : > { %v859_v21 = vpop.f32.mrf.mxu3 }
 0x13c   : > { %v860_v4 = vadd.f32 %v859_v21, %v811_v17 }
 0x13d   : > { %v849_v23 = vpop.f32.mrf.mxu2  ;;  %v754_v26 = vpop.f32.mrf.mxu0 }
 0x13e   : > { %v850_v24 = vadd.f32 %v849_v23, %v801_v18  ;;  %v880_v25 = vadd.f32 %v860_v4, %v365_v19  ;;  %v803_v27 = vpop.f32.mrf.mxu1 }
 0x13f   : > { %v804_v30 = vadd.f32 %v803_v27, %v754_v26 }
 0x140   : > { %v876_v29 = vadd.f32 %v850_v24, %v361_v22  ;;  %896 = vst [vmem:[#allocation2 + $0x70] sm:$0xff] %v880_v25 }
 0x142   : > { %892 = vst [vmem:[#allocation2 + $0x20] sm:$0xff] %v876_v29 }
 0x143   : > { %v862_v33 = vpop.f32.mrf.mxu3 }
 0x144   : > { %v863_v35 = vadd.f32 %v862_v33, %v814_v31 }
 0x145   : > { %v852_v12 = vpop.f32.mrf.mxu2  ;;  %v756_v38 = vpop.f32.mrf.mxu0 }
 0x146   : > { %v853_v36 = vadd.f32 %v852_v12, %v804_v30  ;;  %v881_v37 = vadd.f32 %v863_v35, %v366_v32  ;;  %v805_v40 = vpop.f32.mrf.mxu1 }
 0x147   : > { %v806_v42 = vadd.f32 %v805_v40, %v756_v38 }
 0x148   : > { %v877_v39 = vadd.f32 %v853_v36, %v362_v34  ;;  %897 = vst [vmem:[#allocation2 + $0x78] sm:$0xff] %v881_v37 }
 0x14a   : > { %893 = vst [vmem:[#allocation2 + $0x10] sm:$0xff] %v877_v39 }
 0x14b   : > { %v864_v44 = vpop.f32.mrf.mxu3 }
 0x14c   : > { %v865_v20 = vadd.f32 %v864_v44, %v816_v41 }
 0x14d   : > { %v854_v46 = vpop.f32.mrf.mxu2 }
 0x14e   : > { %v855_v47 = vadd.f32 %v854_v46, %v806_v42  ;;  %v882_v48 = vadd.f32 %v865_v20, %v367_v43  ;;  %902 = sbr.rel (%p1325_p11) target bundleno = 360 (0x168), region = 70 }
 0x150   : > { %v878_v49 = vadd.f32 %v855_v47, %v363_v45  ;;  %898 = vst [vmem:[#allocation2 + $0x28] sm:$0xff] %v882_v48 }
 0x152   : > { %894 = vst [vmem:[#allocation2 + $0x38] sm:$0xff] %v878_v49 }
 0x153   : > { %v903_v50 = vld [vmem:[#allocation2 + $0x30] sm:$0xff]  ;;  %v904_v51 = vld [vmem:[#allocation2] sm:$0xff]  ;;  %v905_v53 = vld [vmem:[#allocation2 + $0x58] sm:$0xff] }
 0x154   : > { %v1493_v28 = vld [vmem:[%s1874_s2] ss:$0 sm:$0xff]  ;;  %v906_v54 = vld [vmem:[#allocation2 + $0x18] sm:$0xff]  ;;  %v907_v55 = vld [vmem:[#allocation2 + $0x50] sm:$0xff] }
 0x155   : > { %v1815_v52 = vld [vmem:[%s1875_s3] ss:$0 sm:$0xff]  ;;  %v923_v57 = vmul.f32 %v1493_v28, %v903_v50  ;;  %v924_v56 = vmul.f32 %v1493_v28, %v904_v51  ;;  %v925_v58 = vmul.f32 %v1493_v28, %v905_v53  ;;  %v926_v59 = vmul.f32 %v1493_v28, %v906_v54  ;;  %v908_v60 = vld [vmem:[#allocation2 + $0x68] sm:$0xff]  ;;  %v913_v19 = vld [vmem:[#allocation2 + $0x10] sm:$0xff] }
 0x156   : > { %v909_v61 = vld [vmem:[#allocation2 + $0x8] sm:$0xff]  ;;  %v927_v63 = vmul.f32 %v1493_v28, %v907_v55  ;;  %v928_v0 = vmul.f32 %v1493_v28, %v908_v60  ;;  %v911_v13 = vld [vmem:[#allocation2 + $0x40] sm:$0xff]  ;;  %v916_v26 = vld [vmem:[#allocation2 + $0x70] sm:$0xff]  ;;  %v933_v35 = vmul.f32 %v1493_v28, %v913_v19 }
 0x157   : > { %v910_v62 = vld [vmem:[#allocation2 + $0x48] sm:$0xff]  ;;  %v929_v1 = vmul.f32 %v1493_v28, %v909_v61  ;;  %v943_v3 = vadd.f32 %v1815_v52, %v923_v57  ;;  %v944_v5 = vadd.f32 %v1815_v52, %v924_v56  ;;  %v945_v6 = vadd.f32 %v1815_v52, %v925_v58  ;;  %v912_v14 = vld [vmem:[#allocation2 + $0x20] sm:$0xff]  ;;  %v917_v32 = vld [vmem:[#allocation2 + $0x78] sm:$0xff] }
 0x158   : > { %v930_v2 = vmul.f32 %v1493_v28, %v910_v62  ;;  %v946_v7 = vadd.f32 %v1815_v52, %v926_v59  ;;  %v947_v8 = vadd.f32 %v1815_v52, %v927_v63  ;;  %v948_v9 = vadd.f32 %v1815_v52, %v928_v0  ;;  %v915_v25 = vld [vmem:[#allocation2 + $0x60] sm:$0xff]  ;;  %v918_v33 = vld [vmem:[#allocation2 + $0x28] sm:$0xff] }
 0x159   : > { %v949_v10 = vadd.f32 %v1815_v52, %v929_v1  ;;  %v959_v15 = vmax.f32 %v943_v3, 0.0  ;;  %v960_v16 = vmax.f32 %v944_v5, 0.0  ;;  %v961_v17 = vmax.f32 %v945_v6, 0.0  ;;  %v914_v21 = vld [vmem:[#allocation2 + $0x38] sm:$0xff] }
 0x15a   : > { %v950_v11 = vadd.f32 %v1815_v52, %v930_v2  ;;  %v962_v18 = vmax.f32 %v946_v7, 0.0  ;;  %v963_v22 = vmax.f32 %v947_v8, 0.0  ;;  %v964_v23 = vmax.f32 %v948_v9, 0.0 }
 0x15b   : > { %v965_v4 = vmax.f32 %v949_v10, 0.0  ;;  %v1382_v27 = vpack.c.bf16 %v960_v16, %v959_v15  ;;  %v931_v30 = vmul.f32 %v1493_v28, %v911_v13  ;;  %v932_v31 = vmul.f32 %v1493_v28, %v912_v14 }
 0x15c   : > { %v966_v24 = vmax.f32 %v950_v11, 0.0  ;;  %v1387_v29 = vpack.c.bf16 %v962_v18, %v961_v17  ;;  %v1392_v34 = vpack.c.bf16 %v964_v23, %v963_v22  ;;  %v934_v36 = vmul.f32 %v1493_v28, %v914_v21 }
 0x15d   : > { %1383 = vst [vmem:[%s1876_s4] sm:$0xff] %v1382_v27   ;;  %v951_v37 = vadd.f32 %v1815_v52, %v931_v30  ;;  %v952_v39 = vadd.f32 %v1815_v52, %v932_v31  ;;  %v935_v38 = vmul.f32 %v1493_v28, %v915_v25  ;;  %v936_v40 = vmul.f32 %v1493_v28, %v916_v26 }
 0x15e   : > { %v1397_v12 = vpack.c.bf16 %v966_v24, %v965_v4  ;;  %1419 = vst [vmem:[%s1876_s4 + $0x8] sm:$0xff] %v1387_v29   ;;  %v953_v41 = vadd.f32 %v1815_v52, %v933_v35  ;;  %v954_v42 = vadd.f32 %v1815_v52, %v934_v36  ;;  %v937_v43 = vmul.f32 %v1493_v28, %v917_v32 }
 0x15f   : > { %v938_v44 = vmul.f32 %v1493_v28, %v918_v33  ;;  %1420 = vst [vmem:[%s1876_s4 + $0x10] sm:$0xff] %v1392_v34   ;;  %v967_v45 = vmax.f32 %v951_v37, 0.0  ;;  %v968_v46 = vmax.f32 %v952_v39, 0.0  ;;  %v955_v20 = vadd.f32 %v1815_v52, %v935_v38 }
 0x160   : > { %v956_v47 = vadd.f32 %v1815_v52, %v936_v40  ;;  %1421 = vst [vmem:[%s1876_s4 + $0x18] sm:$0xff] %v1397_v12   ;;  %v969_v48 = vmax.f32 %v953_v41, 0.0  ;;  %v970_v49 = vmax.f32 %v954_v42, 0.0  ;;  %v957_v50 = vadd.f32 %v1815_v52, %v937_v43 }
 0x161   : > { %v958_v51 = vadd.f32 %v1815_v52, %v938_v44  ;;  %v1402_v28 = vpack.c.bf16 %v968_v46, %v967_v45  ;;  %v971_v53 = vmax.f32 %v955_v20, 0.0 }
 0x162   : > { %v972_v54 = vmax.f32 %v956_v47, 0.0  ;;  %v1407_v55 = vpack.c.bf16 %v970_v49, %v969_v48  ;;  %v973_v57 = vmax.f32 %v957_v50, 0.0 }
 0x163   : > { %v974_v56 = vmax.f32 %v958_v51, 0.0  ;;  %1422 = vst [vmem:[%s1876_s4 + $0x20] sm:$0xff] %v1402_v28  }
 0x164   : > { %v1412_v58 = vpack.c.bf16 %v972_v54, %v971_v53  ;;  %1423 = vst [vmem:[%s1876_s4 + $0x28] sm:$0xff] %v1407_v55  }
 0x165   : > { %v1417_v59 = vpack.c.bf16 %v974_v56, %v973_v57 }
 0x166   : > { %1424 = vst [vmem:[%s1876_s4 + $0x30] sm:$0xff] %v1412_v58  }
 0x167   : > { %1425 = vst [vmem:[%s1876_s4 + $0x38] sm:$0xff] %v1417_v59  }
 0x168 PF: > { %s14_s19 = sadd.s32 1, %s1533_s19   ;;  %s1877_s15 = smov %s1521_s16 }
 0x169   : > { %p11_p12 = scmp.ge.s32.totalorder %s14_s19, 5   ;;  %s1878_s16 = smov %s1596_s23 }
 0x16a   : > { %s1879_s17 = smov %s1529_s18  ;;  %s1880_s18 = smov %s1882_s20 }
 0x16b   :  { %13 = sbr.rel (!%p11_p12) target bundleno = 3 (0x3), region = 114 }

// kernel: bottleneck_forward.5
= control target key start
LH: loop header
LB: loop body
LE: loop exit
PB: predicated region body
PF: predicated region fallthrough
CT: control target
= control target key end

     0   :  { %s1000_s1 = inlined_call_operand.vmem [shape: bf16[128,128], index: 1, kind: input, shape index: {}]   ;;  %s1001_s5 = inlined_call_operand.vmem [shape: bf16[128,128], index: 5, kind: input, shape index: {}]   ;;  %s1002_s2 = inlined_call_operand.vmem [shape: f32[1,128], index: 2, kind: input, shape index: {}]   ;;  %s1003_s3 = inlined_call_operand.vmem [shape: f32[1,128], index: 3, kind: input, shape index: {}]   ;;  %s1004_s0 = inlined_call_operand.vmem [shape: bf16[128,128], index: 0, kind: input, shape index: {}]   ;;  %s1005_s4 = inlined_call_operand.vmem [shape: bf16[128,128], index: 4, kind: input, shape index: {}]   ;;  %s1006_s6 = inlined_call_operand.vmem [shape: f32[1,128], index: 6, kind: input, shape index: {}]   ;;  %s1007_s7 = inlined_call_operand.vmem [shape: f32[1,128], index: 7, kind: input, shape index: {}]   ;;  %s1008_s8 = inlined_call_operand.vmem [shape: f32[128,128], index: 8, kind: output, shape index: {}]  }
   0x1   :  { %v690_v0 = vld [vmem:[%s1000_s1 + $0x38] sm:$0xff]  ;;  %v689_v2 = vld [vmem:[%s1000_s1 + $0x30] sm:$0xff]  ;;  %v688_v4 = vld [vmem:[%s1000_s1 + $0x28] sm:$0xff] }
   0x2   :  { %v706_v1 = vld [vmem:[%s1001_s5 + $0x38] sm:$0xff]  ;;  %157 = vmatpush.bf16.msra.mxu0 %v690_v0  ;;  %707 = vmatpush.bf16.msra.mxu2 %v690_v0  ;;  %v705_v3 = vld [vmem:[%s1001_s5 + $0x30] sm:$0xff]  ;;  %v704_v5 = vld [vmem:[%s1001_s5 + $0x28] sm:$0xff] }
   0x3   :  { %390 = vmatpush.bf16.msra.mxu1 %v706_v1  ;;  %715 = vmatpush.bf16.msra.mxu3 %v706_v1  ;;  %v687_v6 = vld [vmem:[%s1000_s1 + $0x20] sm:$0xff]  ;;  %v686_v8 = vld [vmem:[%s1000_s1 + $0x18] sm:$0xff]  ;;  %v685_v10 = vld [vmem:[%s1000_s1 + $0x10] sm:$0xff] }
   0x4   :  { %v703_v7 = vld [vmem:[%s1001_s5 + $0x20] sm:$0xff]  ;;  %v702_v9 = vld [vmem:[%s1001_s5 + $0x18] sm:$0xff]  ;;  %v701_v11 = vld [vmem:[%s1001_s5 + $0x10] sm:$0xff] }
   0x5   :  { %v684_v12 = vld [vmem:[%s1000_s1 + $0x8] sm:$0xff]  ;;  %v683_v14 = vld [vmem:[%s1000_s1] sm:$0xff]  ;;  %v677_v24 = vld [vmem:[%s1004_s0 + $0x10] sm:$0xff] }
   0x6   :  { %158 = vmatpush.bf16.msra.mxu0 %v689_v2  ;;  %708 = vmatpush.bf16.msra.mxu2 %v689_v2  ;;  %v700_v13 = vld [vmem:[%s1001_s5 + $0x8] sm:$0xff]  ;;  %v699_v15 = vld [vmem:[%s1001_s5] sm:$0xff]  ;;  %v681_v25 = vld [vmem:[%s1004_s0 + $0x30] sm:$0xff] }
   0x7   :  { %391 = vmatpush.bf16.msra.mxu1 %v705_v3  ;;  %716 = vmatpush.bf16.msra.mxu3 %v705_v3  ;;  %v675_v16 = vld [vmem:[%s1004_s0] sm:$0xff]  ;;  %v676_v20 = vld [vmem:[%s1004_s0 + $0x8] sm:$0xff]  ;;  %v693_v26 = vld [vmem:[%s1005_s4 + $0x10] sm:$0xff] }
   0x8   :  { %v679_v17 = vld [vmem:[%s1004_s0 + $0x20] sm:$0xff]  ;;  %v680_v21 = vld [vmem:[%s1004_s0 + $0x28] sm:$0xff]  ;;  %v697_v27 = vld [vmem:[%s1005_s4 + $0x30] sm:$0xff] }
   0x9   :  { %v691_v18 = vld [vmem:[%s1005_s4] sm:$0xff]  ;;  %v692_v22 = vld [vmem:[%s1005_s4 + $0x8] sm:$0xff]  ;;  %v678_v28 = vld [vmem:[%s1004_s0 + $0x18] sm:$0xff] }
   0xa   :  { %159 = vmatpush.bf16.msra.mxu0 %v688_v4  ;;  %709 = vmatpush.bf16.msra.mxu2 %v688_v4  ;;  %v695_v19 = vld [vmem:[%s1005_s4 + $0x20] sm:$0xff]  ;;  %v696_v23 = vld [vmem:[%s1005_s4 + $0x28] sm:$0xff]  ;;  %v682_v29 = vld [vmem:[%s1004_s0 + $0x38] sm:$0xff] }
   0xb   :  { %392 = vmatpush.bf16.msra.mxu1 %v704_v5  ;;  %717 = vmatpush.bf16.msra.mxu3 %v704_v5  ;;  %v694_v30 = vld [vmem:[%s1005_s4 + $0x18] sm:$0xff]  ;;  %v871_v32 = vld [vmem:[%s1002_s2] ss:$0 sm:$0xff] }
   0xc   :  { %v698_v31 = vld [vmem:[%s1005_s4 + $0x38] sm:$0xff]  ;;  %v876_v33 = vld [vmem:[%s1006_s6] ss:$0 sm:$0xff] }
   0xd   :  { %v881_v34 = vld [vmem:[%s1003_s3] ss:$0 sm:$0xff] }
   0xe   :  { %160 = vmatpush.bf16.msra.mxu0 %v687_v6  ;;  %710 = vmatpush.bf16.msra.mxu2 %v687_v6  ;;  %v886_v36 = vld [vmem:[%s1007_s7] ss:$0 sm:$0xff] }
   0xf   :  { %393 = vmatpush.bf16.msra.mxu1 %v703_v7  ;;  %718 = vmatpush.bf16.msra.mxu3 %v703_v7 }
  0x12   :  { %161 = vmatpush.bf16.msra.mxu0 %v686_v8  ;;  %711 = vmatpush.bf16.msra.mxu2 %v686_v8 }
  0x13   :  { %394 = vmatpush.bf16.msra.mxu1 %v702_v9  ;;  %719 = vmatpush.bf16.msra.mxu3 %v702_v9 }
  0x16   :  { %162 = vmatpush.bf16.msra.mxu0 %v685_v10  ;;  %712 = vmatpush.bf16.msra.mxu2 %v685_v10 }
  0x17   :  { %395 = vmatpush.bf16.msra.mxu1 %v701_v11  ;;  %720 = vmatpush.bf16.msra.mxu3 %v701_v11 }
  0x1a   :  { %163 = vmatpush.bf16.msra.mxu0 %v684_v12  ;;  %713 = vmatpush.bf16.msra.mxu2 %v684_v12 }
  0x1b   :  { %396 = vmatpush.bf16.msra.mxu1 %v700_v13  ;;  %721 = vmatpush.bf16.msra.mxu3 %v700_v13 }
  0x1e   :  { %164 = vmatpush.bf16.msra.mxu0 %v683_v14  ;;  %714 = vmatpush.bf16.msra.mxu2 %v683_v14 }
  0x1f   :  { %397 = vmatpush.bf16.msra.mxu1 %v699_v15  ;;  %722 = vmatpush.bf16.msra.mxu3 %v699_v15 }
  0x21   :  { %165 = vmatmul.bf16.vlgmr.msra.gmra.mxu0 %v675_v16  ;;  %185 = vmatmul.bf16.vlgmr.msra.gmra.mxu2 %v679_v17 }
  0x22   :  { %398 = vmatmul.bf16.vlgmr.msra.gmra.mxu1 %v691_v18  ;;  %418 = vmatmul.bf16.vlgmr.msra.gmra.mxu3 %v695_v19 }
  0x31   :  { %170 = vmatmul.bf16.gmra.mxu0 %v676_v20  ;;  %190 = vmatmul.bf16.gmra.mxu2 %v680_v21 }
  0x32   :  { %403 = vmatmul.bf16.gmra.mxu1 %v692_v22  ;;  %423 = vmatmul.bf16.gmra.mxu3 %v696_v23 }
  0x41   :  { %175 = vmatmul.bf16.gmra.mxu0 %v677_v24  ;;  %195 = vmatmul.bf16.gmra.mxu2 %v681_v25 }
  0x42   :  { %408 = vmatmul.bf16.gmra.mxu1 %v693_v26  ;;  %428 = vmatmul.bf16.gmra.mxu3 %v697_v27 }
  0x51   :  { %180 = vmatmul.bf16.gmra.mxu0 %v678_v28  ;;  %200 = vmatmul.bf16.gmra.mxu2 %v682_v29 }
  0x52   :  { %413 = vmatmul.bf16.gmra.mxu1 %v694_v30  ;;  %433 = vmatmul.bf16.gmra.mxu3 %v698_v31 }
  0x9e   :  { %v166_v35 = vpop.f32.mrf.mxu0 }
  0x9f   :  { %v210_v37 = vmul.f32 %v871_v32, %v166_v35  ;;  %v399_v38 = vpop.f32.mrf.mxu1 }
  0xa0   :  { %v443_v39 = vmul.f32 %v876_v33, %v399_v38 }
  0xa1   :  { %v230_v40 = vadd.f32 %v881_v34, %v210_v37 }
  0xa2   :  { %v463_v41 = vadd.f32 %v886_v36, %v443_v39 }
  0xa3   :  { %v246_v42 = vmax.f32 %v230_v40, 0.0 }
  0xa4   :  { %v479_v43 = vmax.f32 %v463_v41, 0.0  ;;  %v186_v44 = vpop.f32.mrf.mxu2 }
  0xa5   :  { %v218_v45 = vmul.f32 %v871_v32, %v186_v44  ;;  %v419_v46 = vpop.f32.mrf.mxu3 }
  0xa6   :  { %v495_v47 = vadd.f32 %v479_v43, %v246_v42  ;;  %v451_v48 = vmul.f32 %v876_v33, %v419_v46  ;;  %v168_v49 = vpop.f32.mrf.mxu0 }
  0xa7   :  { %v238_v50 = vadd.f32 %v881_v34, %v218_v45  ;;  %v211_v51 = vmul.f32 %v871_v32, %v168_v49  ;;  %v401_v52 = vpop.f32.mrf.mxu1 }
  0xa8   :  { %v511_v53 = vmax.f32 %v495_v47, 0.0  ;;  %v471_v54 = vadd.f32 %v886_v36, %v451_v48  ;;  %v444_v55 = vmul.f32 %v876_v33, %v401_v52 }
  0xa9   :  { %v254_v56 = vmax.f32 %v238_v50, 0.0  ;;  %v231_v57 = vadd.f32 %v881_v34, %v211_v51 }
  0xaa   :  { %527 = vst [vmem:[%s1008_s8] sm:$0xff] %v511_v53  ;;  %v487_v58 = vmax.f32 %v471_v54, 0.0  ;;  %v464_v59 = vadd.f32 %v886_v36, %v444_v55 }
  0xab   :  { %v247_v60 = vmax.f32 %v231_v57, 0.0 }
  0xac   :  { %v503_v61 = vadd.f32 %v487_v58, %v254_v56  ;;  %v480_v62 = vmax.f32 %v464_v59, 0.0  ;;  %v188_v63 = vpop.f32.mrf.mxu2 }
  0xad   :  { %v219_v0 = vmul.f32 %v871_v32, %v188_v63  ;;  %v421_v1 = vpop.f32.mrf.mxu3 }
  0xae   :  { %v519_v2 = vmax.f32 %v503_v61, 0.0  ;;  %v496_v3 = vadd.f32 %v480_v62, %v247_v60  ;;  %v452_v4 = vmul.f32 %v876_v33, %v421_v1  ;;  %v171_v5 = vpop.f32.mrf.mxu0 }
  0xaf   :  { %v239_v6 = vadd.f32 %v881_v34, %v219_v0  ;;  %v212_v7 = vmul.f32 %v871_v32, %v171_v5  ;;  %v404_v8 = vpop.f32.mrf.mxu1 }
  0xb0   :  { %535 = vst [vmem:[%s1008_s8 + $0x40] sm:$0xff] %v519_v2  ;;  %v512_v9 = vmax.f32 %v496_v3, 0.0  ;;  %v472_v10 = vadd.f32 %v886_v36, %v452_v4  ;;  %v445_v11 = vmul.f32 %v876_v33, %v404_v8 }
  0xb1   :  { %v255_v12 = vmax.f32 %v239_v6, 0.0  ;;  %v232_v13 = vadd.f32 %v881_v34, %v212_v7 }
  0xb2   :  { %528 = vst [vmem:[%s1008_s8 + $0x8] sm:$0xff] %v512_v9  ;;  %v488_v14 = vmax.f32 %v472_v10, 0.0  ;;  %v465_v15 = vadd.f32 %v886_v36, %v445_v11 }
  0xb3   :  { %v248_v16 = vmax.f32 %v232_v13, 0.0 }
  0xb4   :  { %v504_v17 = vadd.f32 %v488_v14, %v255_v12  ;;  %v481_v18 = vmax.f32 %v465_v15, 0.0  ;;  %v191_v19 = vpop.f32.mrf.mxu2 }
  0xb5   :  { %v220_v20 = vmul.f32 %v871_v32, %v191_v19  ;;  %v424_v21 = vpop.f32.mrf.mxu3 }
  0xb6   :  { %v520_v22 = vmax.f32 %v504_v17, 0.0  ;;  %v497_v23 = vadd.f32 %v481_v18, %v248_v16  ;;  %v453_v24 = vmul.f32 %v876_v33, %v424_v21  ;;  %v173_v25 = vpop.f32.mrf.mxu0 }
  0xb7   :  { %v240_v26 = vadd.f32 %v881_v34, %v220_v20  ;;  %v213_v27 = vmul.f32 %v871_v32, %v173_v25  ;;  %v406_v28 = vpop.f32.mrf.mxu1 }
  0xb8   :  { %536 = vst [vmem:[%s1008_s8 + $0x48] sm:$0xff] %v520_v22  ;;  %v513_v29 = vmax.f32 %v497_v23, 0.0  ;;  %v473_v30 = vadd.f32 %v886_v36, %v453_v24  ;;  %v446_v31 = vmul.f32 %v876_v33, %v406_v28 }
  0xb9   :  { %v256_v35 = vmax.f32 %v240_v26, 0.0  ;;  %v233_v37 = vadd.f32 %v881_v34, %v213_v27 }
  0xba   :  { %529 = vst [vmem:[%s1008_s8 + $0x10] sm:$0xff] %v513_v29  ;;  %v489_v38 = vmax.f32 %v473_v30, 0.0  ;;  %v466_v39 = vadd.f32 %v886_v36, %v446_v31 }
  0xbb   :  { %v249_v40 = vmax.f32 %v233_v37, 0.0 }
  0xbc   :  { %v505_v41 = vadd.f32 %v489_v38, %v256_v35  ;;  %v482_v42 = vmax.f32 %v466_v39, 0.0  ;;  %v193_v43 = vpop.f32.mrf.mxu2 }
  0xbd   :  { %v221_v44 = vmul.f32 %v871_v32, %v193_v43  ;;  %v426_v45 = vpop.f32.mrf.mxu3 }
  0xbe   :  { %v521_v46 = vmax.f32 %v505_v41, 0.0  ;;  %v498_v47 = vadd.f32 %v482_v42, %v249_v40  ;;  %v454_v48 = vmul.f32 %v876_v33, %v426_v45  ;;  %v176_v49 = vpop.f32.mrf.mxu0 }
  0xbf   :  { %v241_v50 = vadd.f32 %v881_v34, %v221_v44  ;;  %v214_v51 = vmul.f32 %v871_v32, %v176_v49  ;;  %v409_v52 = vpop.f32.mrf.mxu1 }
  0xc0   :  { %537 = vst [vmem:[%s1008_s8 + $0x50] sm:$0xff] %v521_v46  ;;  %v514_v53 = vmax.f32 %v498_v47, 0.0  ;;  %v474_v54 = vadd.f32 %v886_v36, %v454_v48  ;;  %v447_v55 = vmul.f32 %v876_v33, %v409_v52 }
  0xc1   :  { %v257_v56 = vmax.f32 %v241_v50, 0.0  ;;  %v234_v57 = vadd.f32 %v881_v34, %v214_v51 }
  0xc2   :  { %530 = vst [vmem:[%s1008_s8 + $0x18] sm:$0xff] %v514_v53  ;;  %v490_v58 = vmax.f32 %v474_v54, 0.0  ;;  %v467_v59 = vadd.f32 %v886_v36, %v447_v55 }
  0xc3   :  { %v250_v60 = vmax.f32 %v234_v57, 0.0 }
  0xc4   :  { %v506_v61 = vadd.f32 %v490_v58, %v257_v56  ;;  %v483_v62 = vmax.f32 %v467_v59, 0.0  ;;  %v196_v63 = vpop.f32.mrf.mxu2 }
  0xc5   :  { %v222_v0 = vmul.f32 %v871_v32, %v196_v63  ;;  %v429_v1 = vpop.f32.mrf.mxu3 }
  0xc6   :  { %v522_v2 = vmax.f32 %v506_v61, 0.0  ;;  %v499_v3 = vadd.f32 %v483_v62, %v250_v60  ;;  %v455_v4 = vmul.f32 %v876_v33, %v429_v1  ;;  %v178_v5 = vpop.f32.mrf.mxu0 }
  0xc7   :  { %v242_v6 = vadd.f32 %v881_v34, %v222_v0  ;;  %v215_v7 = vmul.f32 %v871_v32, %v178_v5  ;;  %v411_v8 = vpop.f32.mrf.mxu1 }
  0xc8   :  { %538 = vst [vmem:[%s1008_s8 + $0x58] sm:$0xff] %v522_v2  ;;  %v515_v9 = vmax.f32 %v499_v3, 0.0  ;;  %v475_v10 = vadd.f32 %v886_v36, %v455_v4  ;;  %v448_v11 = vmul.f32 %v876_v33, %v411_v8 }
  0xc9   :  { %v258_v12 = vmax.f32 %v242_v6, 0.0  ;;  %v235_v13 = vadd.f32 %v881_v34, %v215_v7 }
  0xca   :  { %531 = vst [vmem:[%s1008_s8 + $0x20] sm:$0xff] %v515_v9  ;;  %v491_v14 = vmax.f32 %v475_v10, 0.0  ;;  %v468_v15 = vadd.f32 %v886_v36, %v448_v11 }
  0xcb   :  { %v251_v16 = vmax.f32 %v235_v13, 0.0 }
  0xcc   :  { %v507_v17 = vadd.f32 %v491_v14, %v258_v12  ;;  %v484_v18 = vmax.f32 %v468_v15, 0.0  ;;  %v198_v19 = vpop.f32.mrf.mxu2 }
  0xcd   :  { %v223_v20 = vmul.f32 %v871_v32, %v198_v19  ;;  %v431_v21 = vpop.f32.mrf.mxu3 }
  0xce   :  { %v523_v22 = vmax.f32 %v507_v17, 0.0  ;;  %v500_v23 = vadd.f32 %v484_v18, %v251_v16  ;;  %v456_v24 = vmul.f32 %v876_v33, %v431_v21  ;;  %v181_v25 = vpop.f32.mrf.mxu0 }
  0xcf   :  { %v243_v26 = vadd.f32 %v881_v34, %v223_v20  ;;  %v216_v27 = vmul.f32 %v871_v32, %v181_v25  ;;  %v414_v28 = vpop.f32.mrf.mxu1 }
  0xd0   :  { %539 = vst [vmem:[%s1008_s8 + $0x60] sm:$0xff] %v523_v22  ;;  %v516_v29 = vmax.f32 %v500_v23, 0.0  ;;  %v476_v30 = vadd.f32 %v886_v36, %v456_v24  ;;  %v449_v31 = vmul.f32 %v876_v33, %v414_v28 }
  0xd1   :  { %v259_v35 = vmax.f32 %v243_v26, 0.0  ;;  %v236_v37 = vadd.f32 %v881_v34, %v216_v27 }
  0xd2   :  { %532 = vst [vmem:[%s1008_s8 + $0x28] sm:$0xff] %v516_v29  ;;  %v492_v38 = vmax.f32 %v476_v30, 0.0  ;;  %v469_v39 = vadd.f32 %v886_v36, %v449_v31 }
  0xd3   :  { %v252_v40 = vmax.f32 %v236_v37, 0.0 }
  0xd4   :  { %v508_v41 = vadd.f32 %v492_v38, %v259_v35  ;;  %v485_v42 = vmax.f32 %v469_v39, 0.0  ;;  %v201_v43 = vpop.f32.mrf.mxu2 }
  0xd5   :  { %v224_v44 = vmul.f32 %v871_v32, %v201_v43  ;;  %v434_v45 = vpop.f32.mrf.mxu3 }
  0xd6   :  { %v524_v46 = vmax.f32 %v508_v41, 0.0  ;;  %v501_v47 = vadd.f32 %v485_v42, %v252_v40  ;;  %v457_v48 = vmul.f32 %v876_v33, %v434_v45  ;;  %v183_v49 = vpop.f32.mrf.mxu0 }
  0xd7   :  { %v244_v50 = vadd.f32 %v881_v34, %v224_v44  ;;  %v217_v51 = vmul.f32 %v871_v32, %v183_v49  ;;  %v416_v52 = vpop.f32.mrf.mxu1 }
  0xd8   :  { %540 = vst [vmem:[%s1008_s8 + $0x68] sm:$0xff] %v524_v46  ;;  %v517_v53 = vmax.f32 %v501_v47, 0.0  ;;  %v477_v54 = vadd.f32 %v886_v36, %v457_v48  ;;  %v450_v55 = vmul.f32 %v876_v33, %v416_v52 }
  0xd9   :  { %v260_v56 = vmax.f32 %v244_v50, 0.0  ;;  %v237_v57 = vadd.f32 %v881_v34, %v217_v51 }
  0xda   :  { %533 = vst [vmem:[%s1008_s8 + $0x30] sm:$0xff] %v517_v53  ;;  %v493_v58 = vmax.f32 %v477_v54, 0.0  ;;  %v470_v59 = vadd.f32 %v886_v36, %v450_v55 }
  0xdb   :  { %v253_v60 = vmax.f32 %v237_v57, 0.0 }
  0xdc   :  { %v509_v61 = vadd.f32 %v493_v58, %v260_v56  ;;  %v486_v62 = vmax.f32 %v470_v59, 0.0  ;;  %v203_v63 = vpop.f32.mrf.mxu2 }
  0xdd   :  { %v225_v0 = vmul.f32 %v871_v32, %v203_v63  ;;  %v436_v1 = vpop.f32.mrf.mxu3 }
  0xde   :  { %v525_v2 = vmax.f32 %v509_v61, 0.0  ;;  %v502_v3 = vadd.f32 %v486_v62, %v253_v60  ;;  %v458_v4 = vmul.f32 %v876_v33, %v436_v1 }
  0xdf   :  { %v245_v5 = vadd.f32 %v881_v34, %v225_v0 }
  0xe0   :  { %541 = vst [vmem:[%s1008_s8 + $0x70] sm:$0xff] %v525_v2  ;;  %v518_v6 = vmax.f32 %v502_v3, 0.0  ;;  %v478_v7 = vadd.f32 %v886_v36, %v458_v4 }
  0xe1   :  { %v261_v8 = vmax.f32 %v245_v5, 0.0 }
  0xe2   :  { %534 = vst [vmem:[%s1008_s8 + $0x38] sm:$0xff] %v518_v6  ;;  %v494_v32 = vmax.f32 %v478_v7, 0.0 }
  0xe4   :  { %v510_v9 = vadd.f32 %v494_v32, %v261_v8 }
  0xe6   :  { %v526_v10 = vmax.f32 %v510_v9, 0.0 }
  0xe8   :  { %542 = vst [vmem:[%s1008_s8 + $0x78] sm:$0xff] %v526_v10 }

</bundles_post_ra>
